<compile_context>
chip_gen: v7x
topology: tpu7x:2x2x1
jax: 0.10.0
libtpu: 0.0.40
codegen_flags: <defaults>
</compile_context>

<pallas_src>
import functools

import jax
import jax.numpy as jnp
from jax.experimental import pallas as pl
from jax.experimental.pallas import tpu as pltpu

CONTEXT = 35
INPUT_SIZE = 13 * (CONTEXT * 2 + 1)   # 923
OUTPUT_SIZE = 346
BN_EPS = 1e-5


def _round_up(n, m):
    return ((n + m - 1) // m) * m


# ----------------------------- Pallas kernels ------------------------------
# One grid step computes a full-K, tn-wide slab of  y = epilogue(x @ W + b).
# The tiny activation tile stays resident in VMEM; only the bf16 weight slab
# streams from HBM, so the kernel runs near the HBM roofline.

def _linear_kernel(x_ref, w_ref, b_ref, o_ref, *, apply_relu):
    y = jnp.dot(x_ref[...], w_ref[...], preferred_element_type=jnp.float32)
    y = y + b_ref[...]
    if apply_relu:
        y = jnp.maximum(y, 0.0)
    o_ref[...] = y.astype(o_ref.dtype)


def _linear_bn_kernel(x_ref, w_ref, b_ref, scale_ref, shift_ref, o_ref, *,
                      apply_relu):
    y = jnp.dot(x_ref[...], w_ref[...], preferred_element_type=jnp.float32)
    y = y + b_ref[...]
    if apply_relu:
        y = jnp.maximum(y, 0.0)
    y = y * scale_ref[...] + shift_ref[...]
    o_ref[...] = y.astype(o_ref.dtype)


def fused_linear(x, w, b, scale, shift, *, apply_relu, apply_affine,
                 out_dtype):
    """y = [bn_affine(] relu(x @ w + b) [)] as one Pallas call.

    x: (M, Kp) bf16 (pre-padded), w: (Kp, Np) bf16 (pre-padded/pre-cast),
    b/scale/shift: (1, Np) f32.  Grid walks the N axis only; K is consumed in
    a single MXU pass per slab (no accumulator scratch).
    """
    M, Kp = x.shape
    Np = w.shape[1]
    tn = 512 if Np >= 1024 else max(128, Np // 2)   # >=2 N blocks per layer
    grid = (Np // tn,)

    x_spec = pl.BlockSpec((M, Kp), lambda j: (0, 0))
    w_spec = pl.BlockSpec((Kp, tn), lambda j: (0, j))
    v_spec = pl.BlockSpec((1, tn), lambda j: (0, j))

    if apply_affine:
        kernel = functools.partial(_linear_bn_kernel, apply_relu=apply_relu)
        in_specs = [x_spec, w_spec, v_spec, v_spec, v_spec]
        args = (x, w, b, scale, shift)
    else:
        kernel = functools.partial(_linear_kernel, apply_relu=apply_relu)
        in_specs = [x_spec, w_spec, v_spec]
        args = (x, w, b)

    return pl.pallas_call(
        kernel,
        out_shape=jax.ShapeDtypeStruct((M, Np), out_dtype),
        grid=grid,
        in_specs=in_specs,
        out_specs=pl.BlockSpec((M, tn), lambda j: (0, j)),
        compiler_params=pltpu.CompilerParams(
            dimension_semantics=("parallel",)),
    )(*args)


# ----------------------------- parameter setup -----------------------------

# (in_features, out_features, apply_relu, has_batchnorm)
_LAYER_DEFS = [
    (INPUT_SIZE, 2048, True,  True),
    (2048,       4096, True,  True),
    (4096,       2048, True,  True),
    (2048,       1024, True,  False),  # ReLU -> Dropout(0.2) (identity, eval)
    (1024,        512, True,  False),  # ReLU -> Dropout(0.2) (identity, eval)
    (512, OUTPUT_SIZE, False, False),  # final Linear
]


def init_params(key):
    """Init + pre-pack: padding and the bf16 cast happen ONCE here (hoisted
    out of the forward pass), so per-call weight traffic is only the kernel's
    own bf16 DMA."""
    params = []
    for (fan_in, fan_out, apply_relu, has_bn) in _LAYER_DEFS:
        key, kw, kb, kg, kbeta, km, kv = jax.random.split(key, 7)
        bound = 1.0 / jnp.sqrt(fan_in)
        w = jax.random.uniform(kw, (fan_in, fan_out), jnp.float32, -bound, bound)
        b = jax.random.uniform(kb, (fan_out,), jnp.float32, -bound, bound)

        kp = _round_up(fan_in, 128)
        np_ = _round_up(fan_out, 256)   # 346 -> 512 so final layer gets 2 tiles

        wp = jnp.zeros((kp, np_), jnp.float32).at[:fan_in, :fan_out].set(w)
        wp = wp.astype(jnp.bfloat16)
        bp = jnp.zeros((1, np_), jnp.float32).at[0, :fan_out].set(b)

        layer = dict(w=wp, b=bp, apply_relu=apply_relu, has_affine=has_bn)
        if has_bn:
            gamma = 1.0 + 0.1 * jax.random.normal(kg, (fan_out,), jnp.float32)
            beta = 0.1 * jax.random.normal(kbeta, (fan_out,), jnp.float32)
            running_mean = 0.1 * jax.random.normal(km, (fan_out,), jnp.float32)
            running_var = jax.random.uniform(kv, (fan_out,), jnp.float32, 0.5, 1.5)
            scale = gamma * jax.lax.rsqrt(running_var + BN_EPS)
            shift = beta - running_mean * scale
            layer["scale"] = jnp.zeros((1, np_), jnp.float32).at[0, :fan_out].set(scale)
            layer["shift"] = jnp.zeros((1, np_), jnp.float32).at[0, :fan_out].set(shift)
        params.append(layer)
    return params


# -------------------------------- forward ----------------------------------

def simple_mlp_forward(x, params):
    M = x.shape[0]
    mp = _round_up(M, 8)
    kp0 = params[0]["w"].shape[0]
    # Pad batch to a sublane multiple and features to layer-0's padded K, once.
    h = jnp.zeros((mp, kp0), jnp.float32).at[:M, :x.shape[1]].set(x)
    h = h.astype(jnp.bfloat16)

    n_layers = len(params)
    for idx, p in enumerate(params):
        is_last = idx == n_layers - 1
        h = fused_linear(
            h, p["w"], p["b"], p.get("scale"), p.get("shift"),
            apply_relu=p["apply_relu"],
            apply_affine=p["has_affine"],
            out_dtype=jnp.float32 if is_last else jnp.bfloat16)
    return h[:M, :OUTPUT_SIZE]


def _reference_forward(x, params):
    """Pure-JAX reference reproducing the same (bf16-weight, f32-accum) math."""
    M = x.shape[0]
    kp0 = params[0]["w"].shape[0]
    h = jnp.zeros((M, kp0), jnp.float32).at[:, :x.shape[1]].set(x)
    h = h.astype(jnp.bfloat16)
    n_layers = len(params)
    for idx, p in enumerate(params):
        y = jnp.dot(h, p["w"], preferred_element_type=jnp.float32) + p["b"]
        if p["apply_relu"]:
            y = jnp.maximum(y, 0.0)
        if p["has_affine"]:
            y = y * p["scale"] + p["shift"]
        h = y.astype(jnp.float32 if idx == n_layers - 1 else jnp.bfloat16)
    return h[:, :OUTPUT_SIZE]


if __name__ == "__main__":
    key = jax.random.PRNGKey(0)
    key, kx = jax.random.split(key)

    batch = 16
    x = jax.random.normal(kx, (batch, INPUT_SIZE), jnp.float32)

    params = init_params(key)

    out = simple_mlp_forward(x, params)
    out = jax.block_until_ready(out)
    assert out.shape == (batch, OUTPUT_SIZE), out.shape

    ref = jax.block_until_ready(_reference_forward(x, params))
    err = float(jnp.max(jnp.abs(out - ref)))
    assert err < 2e-2, f"mismatch vs reference: {err}"

    print("KERNEL_OK")
</pallas_src>

<mosaic_0001>
module attributes {stable_mosaic.version = 11 : i64} {
  func.func @_linear_bn_kernel(%arg0: i32, %arg1: memref<16x1024xbf16, #tpu.memory_space<vmem>>, %arg2: memref<1024x512xbf16, #tpu.memory_space<vmem>>, %arg3: memref<1x512xf32, #tpu.memory_space<vmem>>, %arg4: memref<1x512xf32, #tpu.memory_space<vmem>>, %arg5: memref<1x512xf32, #tpu.memory_space<vmem>>, %arg6: memref<16x512xbf16, #tpu.memory_space<vmem>>) attributes {dimension_semantics = [#tpu.dimension_semantics<parallel>], iteration_bounds = array<i64: 4>, scalar_prefetch = 0 : i64, scratch_operands = 0 : i64, tpu.core_type = #tpu.core_type<tc>, window_params = [{pipeline_mode = #tpu.pipeline_mode<synchronous>, transform_indices = @transform_0, window_bounds = array<i64: 16, 1024>}, {transform_indices = @transform_1, window_bounds = array<i64: 1024, 512>}, {transform_indices = @transform_2, window_bounds = array<i64: 1, 512>}, {transform_indices = @transform_3, window_bounds = array<i64: 1, 512>}, {transform_indices = @transform_4, window_bounds = array<i64: 1, 512>}, {transform_indices = @transform_5, window_bounds = array<i64: 16, 512>}]} {
    %c0 = arith.constant 0 : index
    %c0_0 = arith.constant 0 : index
    %0 = vector.load %arg1[%c0, %c0_0] : memref<16x1024xbf16, #tpu.memory_space<vmem>>, vector<16x1024xbf16>
    %c0_1 = arith.constant 0 : index
    %c0_2 = arith.constant 0 : index
    %1 = vector.load %arg2[%c0_1, %c0_2] : memref<1024x512xbf16, #tpu.memory_space<vmem>>, vector<1024x512xbf16>
    %cst = arith.constant dense<0.000000e+00> : vector<16x512xf32>
    %2 = tpu.matmul %0, %1, %cst {dimension_numbers = #tpu.dot_dimension_numbers<[1], [0], [0], [1], [0, 0, 1, 1], [], []>} : vector<16x1024xbf16>, vector<1024x512xbf16>, vector<16x512xf32> -> vector<16x512xf32>
    %c0_3 = arith.constant 0 : index
    %c0_4 = arith.constant 0 : index
    %3 = vector.load %arg3[%c0_3, %c0_4] : memref<1x512xf32, #tpu.memory_space<vmem>>, vector<1x512xf32>
    %4 = vector.broadcast %3 : vector<1x512xf32> to vector<16x512xf32>
    %5 = arith.addf %2, %4 : vector<16x512xf32>
    %cst_5 = arith.constant 0.000000e+00 : f32
    %6 = vector.broadcast %cst_5 : f32 to vector<16x512xf32>
    %7 = arith.maximumf %5, %6 : vector<16x512xf32>
    %c0_6 = arith.constant 0 : index
    %c0_7 = arith.constant 0 : index
    %8 = vector.load %arg4[%c0_6, %c0_7] : memref<1x512xf32, #tpu.memory_space<vmem>>, vector<1x512xf32>
    %9 = vector.broadcast %8 : vector<1x512xf32> to vector<16x512xf32>
    %10 = arith.mulf %7, %9 : vector<16x512xf32>
    %c0_8 = arith.constant 0 : index
    %c0_9 = arith.constant 0 : index
    %11 = vector.load %arg5[%c0_8, %c0_9] : memref<1x512xf32, #tpu.memory_space<vmem>>, vector<1x512xf32>
    %12 = vector.broadcast %11 : vector<1x512xf32> to vector<16x512xf32>
    %13 = arith.addf %10, %12 : vector<16x512xf32>
    %14 = arith.truncf %13 : vector<16x512xf32> to vector<16x512xbf16>
    %c0_10 = arith.constant 0 : index
    %c0_11 = arith.constant 0 : index
    %15 = vector.load %arg6[%c0_10, %c0_11] : memref<16x512xbf16, #tpu.memory_space<vmem>>, vector<16x512xbf16>
    tpu.vector_store %arg6[%c0_10, %c0_11], %14 {strides = array<i32>} : memref<16x512xbf16, #tpu.memory_space<vmem>>, vector<16x512xbf16>,
    return
  }
  func.func @transform_0(%arg0: i32) -> (i32, i32) {
    %c0_i32 = arith.constant 0 : i32
    %c0_i32_0 = arith.constant 0 : i32
    %c0_i32_1 = arith.constant 0 : i32
    return %c0_i32, %c0_i32_0 : i32, i32
  }
  func.func @transform_1(%arg0: i32) -> (i32, i32) {
    %c0_i32 = arith.constant 0 : i32
    %c0_i32_0 = arith.constant 0 : i32
    return %c0_i32, %arg0 : i32, i32
  }
  func.func @transform_2(%arg0: i32) -> (i32, i32) {
    %c0_i32 = arith.constant 0 : i32
    %c0_i32_0 = arith.constant 0 : i32
    return %c0_i32, %arg0 : i32, i32
  }
  func.func @transform_3(%arg0: i32) -> (i32, i32) {
    %c0_i32 = arith.constant 0 : i32
    %c0_i32_0 = arith.constant 0 : i32
    return %c0_i32, %arg0 : i32, i32
  }
  func.func @transform_4(%arg0: i32) -> (i32, i32) {
    %c0_i32 = arith.constant 0 : i32
    %c0_i32_0 = arith.constant 0 : i32
    return %c0_i32, %arg0 : i32, i32
  }
  func.func @transform_5(%arg0: i32) -> (i32, i32) {
    %c0_i32 = arith.constant 0 : i32
    %c0_i32_0 = arith.constant 0 : i32
    return %c0_i32, %arg0 : i32, i32
  }
}

</mosaic_0001>

<bundles_post_ra>
// kernel: tpu_custom_call.1
= control target key start
LH: loop header
LB: loop body
LE: loop exit
PB: predicated region body
PF: predicated region fallthrough
CT: control target
= control target key end

     0   :  { %s4237_s0 = inlined_call_operand.hbm [shape: bf16[16,1024], index: 0, kind: input, shape index: {}]   ;;  %s4238_s1 = inlined_call_operand.hbm [shape: bf16[1024,2048], index: 1, kind: input, shape index: {}]   ;;  %s4239_s2 = inlined_call_operand.hbm [shape: f32[1,2048], index: 2, kind: input, shape index: {}]   ;;  %s4240_s3 = inlined_call_operand.hbm [shape: f32[1,2048], index: 3, kind: input, shape index: {}]   ;;  %s4241_s4 = inlined_call_operand.hbm [shape: f32[1,2048], index: 4, kind: input, shape index: {}]   ;;  %s4242_s5 = inlined_call_operand.hbm [shape: bf16[16,2048], index: 5, kind: output, shape index: {}]  }
   0x1   :  { %4256 = sst [smem:[#allocation19_spill]] %s4238_s1 }
   0x2   :  { %4257 = sst [smem:[#allocation20_spill]] %s4240_s3 }
   0x3   :  { %10 = vsyncpa [#allocation3], 0 }
   0x4   :  { %11 = vsyncpa [#allocation6], 0 }
   0x5   :  { %13 = vsyncpa [#allocation6 + $0x1], 0 }
   0x6   :  { %14 = vsyncpa [#allocation9], 0 }
   0x7   :  { %16 = vsyncpa [#allocation9 + $0x1], 0 }
   0x8   :  { %17 = vsyncpa [#allocation4], 0 }
   0x9   :  { %19 = vsyncpa [#allocation4 + $0x1], 0  ;;  %s3648_s18 = smov 0   ;;  %s3650_s19 = smov 0  }
   0xa   :  { %s3652_s20 = smov 0   ;;  %s3654_s21 = smov 0  }
   0xb LB: > { %4258 = sst [smem:[#allocation16_spill]] %s3598_s20  ;;  %s3669_s22 = sadd.s32 1, %s3602_s21   ;;  %s3602_s21 = sphi %s3654_s21, %s4282_s21   ;;  %s3598_s20 = sphi %s3652_s20, %s4284_s20   ;;  %s3594_s19 = sphi %s3650_s19, %s4286_s19   ;;  %s3590_s18 = sphi %s3648_s18, %s4285_s18  }
   0xc   : > { %4259 = sst [smem:[#allocation17_spill]] %s3669_s22  ;;  %s53_s23 = sadd.s32 1, %s3598_s20 }
   0xd   : > { %s50_s24 = ssub.s32 %s3602_s21, %s3669_s22  ;;  %p4243_p0 = scmp.ne.s32.totalorder %s3598_s20, %s3594_s19 }
   0xe   : > { %p51_p1 = scmp.eq.s32.totalorder %s50_s24, 0  ;;  %p61_p2 = scmp.eq.s32.totalorder %s3602_s21, 0 }
   0xf   : > { %p2952_p3 = scmp.lt.s32.totalorder %s3602_s21, 4  ;;  %s207_s26 = sand.u32 1, %s3602_s21  }
  0x10   : > { %s3679_s25 = scalar_select %p51_p1, %s3598_s20, %s53_s23  }
  0x11   : > { %p62_p4 = por %p61_p2, %p4243_p0  ;;  %s209_s27 = sand.u32 1, %s3598_s20  }
  0x12   : > { %4260 = sst [smem:[#allocation18_spill]] %s3679_s25  ;;  %s2583_s28 = sshll.u32 %s209_s27, 11 }
  0x13   : > { %s2875_s29 = sshll.u32 %s3602_s21, 8  ;;  %s4261_s1 = sld [smem:[#allocation19_spill]] }
  0x14   : > { %s211_s8 = scalar_lea.vmem [#allocation5], %s2583_s28  ;;  %p3692_p5 = pnand %p2952_p3, %p62_p4 }
  0x15   : > { %s218_s9 = sshll.u32 %s211_s8, 4  ;;  %s3698_s11 = sshll.u32 %s209_s27, 2  ;;  %s3696_s9 = int_to_ptr.vmem [resolvable:$true] %s218_s9 }
  0x16   : > { %s4262_s10 = scalar_select %p3692_p5, 1, 0 }
  0x17   : > { %s3702_s12 = scalar_lea.sflag [#allocation6], %s207_s26  ;;  %p3708_p7 = pneg %p3692_p5 }
  0x19   : > { %s3690_s7 = scalar_lea.hbm %s4261_s1, %s2875_s29  ;;  %s3385_s17 = scalar_lea.hbm %s4261_s1, 131072 }
  0x1a   : > { %s3380_s13 = scalar_lea.hbm %s3690_s7, 32768  ;;  %p3386_p10 = scmp.lt.u32.totalorder %s3690_s7, %s4261_s1 }
  0x1b   : > { %p3381_p6 = scmp.ne.s32.totalorder %s3690_s7, %s3380_s13  ;;  %p3387_p11 = scmp.lt.u32.totalorder %s3385_s17, %s3380_s13 }
  0x1c   : > { %s4263_s14 = scalar_select %p3708_p7, 1, 0 }
  0x1d   : > { %p3383_p8 = pnand %p3708_p7, %p3381_p6  ;;  %p3388_p12 = por %p3387_p11, %p3386_p10 }
  0x1e   : > { %p3389_p13 = scmp.lt.u32.totalorder %s3380_s13, %s3690_s7 }
  0x1f   : > { %p3384_p9 = pneg %p3383_p8 }
  0x20   : > { %p3390_p1 = por %p3389_p13, %p3388_p12 }
  0x22   : > { %p3391_p2 = pnand %p3390_p1, %p3384_p9 }
  0x24   : > { %3394 = shalt.err (!%p3391_p2)
}
  0x25   : > { %s3395_s27 = scalar_lea.vmem %s3696_s9, 32768  ;;  %s3604_s28 = smov [#allocation5]  }
  0x26   : > { %p3396_p3 = scmp.ne.s32.totalorder %s3696_s9, %s3395_s27  ;;  %s3400_s29 = sshll.u32 %s3604_s28, 4  ;;  %s3401_s29 = int_to_ptr.vmem [resolvable:$false] %s3400_s29 }
  0x27   : > { %s3402_s30 = scalar_lea.vmem %s3401_s29, 65536  ;;  %p3403_p8 = scmp.lt.s32.totalorder %s3696_s9, %s3401_s29 }
  0x28   : > { %p3398_p4 = pnand %p3396_p3, %p3708_p7  ;;  %p3404_p0 = scmp.lt.s32.totalorder %s3402_s30, %s3395_s27 }
  0x2a   : > { %p3399_p6 = pneg %p3398_p4  ;;  %p3405_p10 = por %p3404_p0, %p3403_p8 }
  0x2c   : > { %p3406_p11 = pnand %p3405_p10, %p3399_p6 }
  0x2e   : > { %3409 = shalt.err (!%p3406_p11)
}
  0x2f   : > { %s3605_s6 = smov 1024   ;;  %s3606_s8 = smov 256  }
  0x30   : > { %s3607_s13 = smov 16   ;;  %s3733_s15 = sshll.u32 %s3602_s21, 6 }
  0x31   : > { %2937 = dma.hbm_to_vmem [thread:$0]  (!%p3692_p5), %s3690_s7, 32768, %s3696_s9, %s3702_s12, %s3605_s6, %s3606_s8, %s3607_s13  }
  0x32   : > { %s4264_s3 = sld [smem:[#allocation20_spill]]  ;;  %s251_s24 = scalar_lea.vmem [#allocation8], %s3698_s11 }
  0x33   : > { %s259_s27 = sshll.u32 %s251_s24, 4  ;;  %s3744_s28 = scalar_lea.sflag [#allocation9], %s207_s26  ;;  %s260_s27 = int_to_ptr.vmem [resolvable:$true] %s259_s27 }
  0x38   : > { %s3739_s23 = scalar_lea.hbm %s4264_s3, %s3733_s15  ;;  %s3415_s30 = scalar_lea.hbm %s4264_s3, 256 }
  0x39   : > { %s3410_s29 = scalar_lea.hbm %s3739_s23, 64  ;;  %p3416_p13 = scmp.lt.u32.totalorder %s3739_s23, %s4264_s3 }
  0x3a   : > { %p3411_p0 = scmp.ne.s32.totalorder %s3739_s23, %s3410_s29  ;;  %p3417_p1 = scmp.lt.u32.totalorder %s3415_s30, %s3410_s29 }
  0x3b   : > { %p3419_p3 = scmp.lt.u32.totalorder %s3410_s29, %s3739_s23 }
  0x3c   : > { %p3413_p9 = pnand %p3411_p0, %p3708_p7  ;;  %p3418_p2 = por %p3417_p1, %p3416_p13 }
  0x3e   : > { %p3414_p12 = pneg %p3413_p9  ;;  %p3420_p4 = por %p3419_p3, %p3418_p2 }
  0x40   : > { %p3421_p6 = pnand %p3420_p4, %p3414_p12 }
  0x42   : > { %3424 = shalt.err (!%p3421_p6)
}
  0x43   : > { %s3425_s26 = scalar_lea.vmem %s260_s27, 64  ;;  %s3608_s13 = smov [#allocation8]  }
  0x44   : > { %p3426_p8 = scmp.ne.s32.totalorder %s260_s27, %s3425_s26  ;;  %s3430_s16 = sshll.u32 %s3608_s13, 4  ;;  %s3431_s16 = int_to_ptr.vmem [resolvable:$false] %s3430_s16 }
  0x45   : > { %s3432_s17 = scalar_lea.vmem %s3431_s16, 128  ;;  %p3433_p0 = scmp.lt.s32.totalorder %s260_s27, %s3431_s16 }
  0x46   : > { %p3428_p10 = pnand %p3426_p8, %p3708_p7  ;;  %p3434_p9 = scmp.lt.s32.totalorder %s3432_s17, %s3425_s26 }
  0x48   : > { %p3429_p11 = pneg %p3428_p10  ;;  %p3435_p5 = por %p3434_p9, %p3433_p0 }
  0x4a   : > { %p3436_p1 = pnand %p3435_p5, %p3429_p11 }
  0x4c   : > { %3439 = shalt.err (!%p3436_p1)
}
  0x4d   : > { %p4265_p13 = scmp.ne.s32.totalorder %s4262_s10, 0  ;;  %s3765_s24 = sadd.s32 4294967295, %s3602_s21  }
  0x4e   : > { %s2579_s29 = sadd.s32 4294967294, %s3602_s21   ;;  %p66_p5 = scmp.ne.s32.totalorder %s3594_s19, %s3590_s18 }
  0x4f   : > { %2943 = dma.hbm_to_vmem [thread:$0]  (!%p4265_p13), %s3739_s23, 64, %s260_s27, %s3744_s28  }
  0x50   : > { %p4246_p12 = scmp.eq.s32.totalorder %s3765_s24, 0  ;;  %p168_p2 = scmp.eq.s32.totalorder %s3765_s24, 3 }
  0x51   : > { %p174_p3 = scmp.eq.s32.totalorder %s2579_s29, 3  ;;  %p2580_p6 = scmp.ge.s32.totalorder %s3602_s21, 1 }
  0x52   : > { %p3774_p4 = por %p4246_p12, %p66_p5  ;;  %p4267_p8 = scmp.ne.s32.totalorder %s3598_s20, %s3594_s19 }
  0x53   : > { %p3786_p11 = por %p174_p3, %p66_p5  ;;  %p181_p0 = scmp.lt.s32.totalorder %s3602_s21, 5 }
  0x54   : > { %s4266_s7 = scalar_select %p3774_p4, 1, 0 }
  0x55   : > { %p3782_p10 = por %p168_p2, %p4267_p8  ;;  %p3791_p9 = pnand %p2580_p6, %p181_p0 }
  0x56   : > { %s4269_s27 = scalar_select %p3786_p11, 1, 0 }
  0x57   : > { %s4268_s23 = scalar_select %p3782_p10, 1, 0 }
  0x58   : > { %s4270_s9 = scalar_select %p3791_p9, 1, 0 }
  0x59   : > { %s3609_s30 = smov [#allocation2]   ;;  %p2930_p1 = pneg %p3791_p9 }
  0x5a   : > { %s193_s6 = sshll.u32 %s3609_s30, 4  ;;  %s3803_s13 = scalar_lea.hbm %s4239_s2, %s3733_s15  ;;  %s3795_s6 = int_to_ptr.vmem [resolvable:$true] %s193_s6 }
  0x5b   : > { %s232_s16 = scalar_lea.vmem [#allocation7], %s3698_s11  ;;  %p3808_p5 = pnand %p2930_p1, %p4246_p12 }
  0x5c   : > { %s240_s17 = sshll.u32 %s232_s16, 4  ;;  %s3440_s30 = scalar_lea.hbm %s3803_s13, 64  ;;  %s241_s17 = int_to_ptr.vmem [resolvable:$true] %s240_s17 }
  0x5d   : > { %s4271_s29 = scalar_select %p3808_p5, 1, 0 }
  0x5e   : > { %p3441_p2 = scmp.ne.s32.totalorder %s3803_s13, %s3440_s30  ;;  %s3445_s1 = scalar_lea.hbm %s4239_s2, 256 }
  0x5f   : > { %p3446_p8 = scmp.lt.u32.totalorder %s3803_s13, %s4239_s2  ;;  %p3447_p0 = scmp.lt.u32.totalorder %s3445_s1, %s3440_s30 }
  0x60   : > { %p3443_p3 = pnand %p3441_p2, %p3708_p7  ;;  %p3449_p1 = scmp.lt.u32.totalorder %s3440_s30, %s3803_s13 }
  0x61   : > { %p3448_p11 = por %p3447_p0, %p3446_p8 }
  0x62   : > { %p3444_p6 = pneg %p3443_p3 }
  0x63   : > { %p3450_p12 = por %p3449_p1, %p3448_p11 }
  0x65   : > { %p3451_p10 = pnand %p3450_p12, %p3444_p6 }
  0x67   : > { %3454 = shalt.err (!%p3451_p10)
}
  0x68   : > { %s3455_s16 = scalar_lea.vmem %s241_s17, 64  ;;  %s3610_s20 = smov [#allocation7]  }
  0x69   : > { %p3456_p4 = scmp.ne.s32.totalorder %s241_s17, %s3455_s16  ;;  %s3460_s22 = sshll.u32 %s3610_s20, 4  ;;  %s3461_s22 = int_to_ptr.vmem [resolvable:$false] %s3460_s22 }
  0x6a   : > { %s3462_s8 = scalar_lea.vmem %s3461_s22, 128  ;;  %p3463_p9 = scmp.lt.s32.totalorder %s241_s17, %s3461_s22 }
  0x6b   : > { %p3458_p2 = pnand %p3456_p4, %p3708_p7  ;;  %p3464_p5 = scmp.lt.s32.totalorder %s3462_s8, %s3455_s16 }
  0x6d   : > { %p3459_p3 = pneg %p3458_p2  ;;  %p3465_p13 = por %p3464_p5, %p3463_p9 }
  0x6f   : > { %p3466_p0 = pnand %p3465_p13, %p3459_p3 }
  0x71   : > { %3469 = shalt.err (!%p3466_p0)
}
  0x72   : > { %p4272_p8 = scmp.ne.s32.totalorder %s4262_s10, 0  ;;  %s3470_s25 = scalar_lea.hbm %s4237_s0, 1024 }
  0x73   : > { %p3471_p12 = scmp.ne.s32.totalorder %s4237_s0, %s3470_s25  ;;  %p4273_p4 = scmp.ne.s32.totalorder %s4271_s29, 0 }
  0x74   : > { %2940 = dma.hbm_to_vmem [thread:$0]  (!%p4272_p8), %s3803_s13, 64, %s241_s17, %s3702_s12  }
  0x75   : > { %p3472_p10 = pneg %p4273_p4  ;;  %p3477_p13 = scmp.lt.u32.totalorder %s3470_s25, %s4237_s0 }
  0x77   : > { %p3473_p11 = pnand %p3472_p10, %p3471_p12 }
  0x79   : > { %p3474_p9 = pneg %p3473_p11 }
  0x7b   : > { %p3479_p5 = pnand %p3477_p13, %p3474_p9 }
  0x7d   : > { %3482 = shalt.err (!%p3479_p5)
}
  0x7e   : > { %s3483_s12 = scalar_lea.vmem %s3795_s6, 1024  ;;  %p3491_p3 = scmp.lt.s32.totalorder %s3795_s6, %s3795_s6 }
  0x7f   : > { %p3484_p6 = scmp.ne.s32.totalorder %s3795_s6, %s3483_s12  ;;  %p3492_p0 = scmp.lt.s32.totalorder %s3483_s12, %s3483_s12 }
  0x81   : > { %p3486_p1 = pnand %p3484_p6, %p3472_p10  ;;  %p3493_p8 = por %p3492_p0, %p3491_p3 }
  0x83   : > { %p3487_p2 = pneg %p3486_p1 }
  0x85   : > { %p3494_p7 = pnand %p3493_p8, %p3487_p2 }
  0x87   : > { %3497 = shalt.err (!%p3494_p7)
}
  0x88   : > { %s3611_s13 = smov 512   ;;  %s3612_s17 = smov 32  }
  0x89   : > { %2933 = dma.hbm_to_vmem [thread:$0]  (!%p4273_p4), %s4237_s0, 1024, %s3795_s6, [#allocation3], %s3611_s13, %s3611_s13, %s3612_s17  }
  0x8a   : > { %s3855_s25 = scalar_lea.hbm %s4241_s4, %s3733_s15  ;;  %s270_s30 = scalar_lea.vmem [#allocation10], %s3698_s11 }
  0x8b   : > { %s278_s26 = sshll.u32 %s270_s30, 4  ;;  %s3498_s20 = scalar_lea.hbm %s3855_s25, 64  ;;  %s279_s26 = int_to_ptr.vmem [resolvable:$true] %s278_s26 }
  0x8c   : > { %p3499_p7 = scmp.ne.s32.totalorder %s3855_s25, %s3498_s20  ;;  %p4274_p8 = scmp.ne.s32.totalorder %s4263_s14, 0 }
  0x8d   : > { %s3503_s6 = scalar_lea.hbm %s4241_s4, 256  ;;  %p3504_p4 = scmp.lt.u32.totalorder %s3855_s25, %s4241_s4 }
  0x8e   : > { %p3501_p12 = pnand %p3499_p7, %p4274_p8  ;;  %p3505_p11 = scmp.lt.u32.totalorder %s3503_s6, %s3498_s20 }
  0x8f   : > { %p3507_p13 = scmp.lt.u32.totalorder %s3498_s20, %s3855_s25 }
  0x90   : > { %p3502_p10 = pneg %p3501_p12  ;;  %p3506_p9 = por %p3505_p11, %p3504_p4 }
  0x92   : > { %p3508_p5 = por %p3507_p13, %p3506_p9 }
  0x94   : > { %p3509_p6 = pnand %p3508_p5, %p3502_p10 }
  0x96   : > { %3512 = shalt.err (!%p3509_p6)
}
  0x97   : > { %s3513_s11 = scalar_lea.vmem %s279_s26, 64  ;;  %s3613_s15 = smov [#allocation10]  }
  0x98   : > { %p3514_p1 = scmp.ne.s32.totalorder %s279_s26, %s3513_s11  ;;  %s3518_s17 = sshll.u32 %s3613_s15, 4  ;;  %s3519_s17 = int_to_ptr.vmem [resolvable:$false] %s3518_s17 }
  0x99   : > { %s3520_s16 = scalar_lea.vmem %s3519_s17, 128  ;;  %p3521_p0 = scmp.lt.s32.totalorder %s279_s26, %s3519_s17 }
  0x9a   : > { %p3516_p2 = pnand %p3514_p1, %p4274_p8  ;;  %p3522_p7 = scmp.lt.s32.totalorder %s3520_s16, %s3513_s11 }
  0x9c   : > { %p3517_p3 = pneg %p3516_p2  ;;  %p3523_p12 = por %p3522_p7, %p3521_p0 }
  0x9e   : > { %p3524_p4 = pnand %p3523_p12, %p3517_p3 }
  0xa0   : > { %3527 = shalt.err (!%p3524_p4)
}
  0xa1   : > { %p4275_p11 = scmp.ne.s32.totalorder %s4262_s10, 0  ;;  %p4276_p10 = scmp.ne.s32.totalorder %s4270_s9, 0 }
  0xa2   : > { %p4277_p8 = scmp.eq.s32.totalorder (!%p4276_p10), %s3765_s24, 0 }
  0xa3   : > { %2946 = dma.hbm_to_vmem [thread:$0]  (!%p4275_p11), %s3855_s25, 64, %s279_s26, %s3744_s28  }
  0xa4   : > { %287 = sbr.rel (%p4276_p10) target bundleno = 678 (0x2a6), region = 40 }
  0xab   : > { %3573 = dma.done.wait (%p4277_p8), [#allocation3], 1024   ;;  %p4278_p9 = pmov %p4277_p8 }
  0xac   : > { %s293_s14 = sand.u32 1, %s3765_s24   ;;  %s3884_s8 = sand.u32 1, %s3594_s19  }
  0xad   : > { %3575 = vsyncadd (%p4278_p9), [#allocation3], 4294966272  ;;  %s2597_s10 = sshll.u32 %s3884_s8, 11  ;;  %s294_s1 = scalar_lea.sflag [#allocation6], %s293_s14 }
  0xae   : > { %s3887_s3 = scalar_lea.vmem [#allocation5], %s2597_s10  ;;  %p4279_p13 = scmp.ne.s32.totalorder %s4266_s7, 0 }
  0xb0   : > { %3577 = dma.done.wait (%p4279_p13), %s294_s1, 32832  }
  0xb1   : > { %3579 = vsyncadd (%p4279_p13), %s294_s1, 4294934464  ;;  %s3894_s28 = sshll.u32 %s3884_s8, 2  ;;  %s312_s25 = scalar_lea.sflag [#allocation9], %s293_s14 }
  0xb2   : > { %s306_s9 = scalar_lea.vmem [#allocation7], %s3894_s28  ;;  %s315_s30 = scalar_lea.vmem [#allocation8], %s3894_s28 }
  0xb3   : > { %3581 = dma.done.wait (%p4279_p13), %s312_s25, 128  }
  0xb4   : > { %3583 = vsyncadd (%p4279_p13), %s312_s25, 4294967168  ;;  %v2996_v0 = vld [vmem:[%s3887_s3 + $0x4] ss:$16 sps:$4 sm:$0xff]   ;;  %v2998_v1 = vld [vmem:[%s3887_s3 + $0xc] ss:$16 sps:$4 sm:$0xff]   ;;  %s324_s7 = scalar_lea.vmem [#allocation10], %s3894_s28 }
  0xb5   : > { %1977 = vmatprep.subr.bf16.mxu0 %v2996_v0  ;;  %v3000_v2 = vld [vmem:[%s3887_s3] ss:$16 sps:$4 sm:$0xff]   ;;  %v3001_v3 = vld [vmem:[%s3887_s3 + $0x8] ss:$16 sps:$4 sm:$0xff]   ;;  %2149 = vmatprep.subr.bf16.mxu1 %v2998_v1  ;;  %v3002_v4 = vld [vmem:[%s3887_s3 + $0x24] ss:$16 sps:$4 sm:$0xff]  }
  0xb6   : > { %1978 = vmatpush1.bf16.msra.mxu0 %v3000_v2  ;;  %2150 = vmatpush1.bf16.msra.mxu1 %v3001_v3  ;;  %v3004_v5 = vld [vmem:[%s3887_s3 + $0x2c] ss:$16 sps:$4 sm:$0xff]   ;;  %v3006_v6 = vld [vmem:[%s3887_s3 + $0x20] ss:$16 sps:$4 sm:$0xff]   ;;  %v3007_v7 = vld [vmem:[%s3887_s3 + $0x28] ss:$16 sps:$4 sm:$0xff]  }
  0xb7   : > { %1979 = vmatprep.subr.bf16.mxu0 %v3002_v4  ;;  %2151 = vmatprep.subr.bf16.mxu1 %v3004_v5  ;;  %v3008_v8 = vld [vmem:[%s3887_s3 + $0x44] ss:$16 sps:$4 sm:$0xff]   ;;  %v3010_v9 = vld [vmem:[%s3887_s3 + $0x4c] ss:$16 sps:$4 sm:$0xff]   ;;  %v3012_v10 = vld [vmem:[%s3887_s3 + $0x40] ss:$16 sps:$4 sm:$0xff]  }
  0xb8   : > { %v3013_v11 = vld [vmem:[%s3887_s3 + $0x48] ss:$16 sps:$4 sm:$0xff]   ;;  %v3014_v12 = vld [vmem:[%s3887_s3 + $0x64] ss:$16 sps:$4 sm:$0xff]   ;;  %v3016_v13 = vld [vmem:[%s3887_s3 + $0x6c] ss:$16 sps:$4 sm:$0xff]  }
  0xb9   : > { %v3018_v14 = vld [vmem:[%s3887_s3 + $0x60] ss:$16 sps:$4 sm:$0xff]   ;;  %v3019_v15 = vld [vmem:[%s3887_s3 + $0x68] ss:$16 sps:$4 sm:$0xff]   ;;  %v3020_v16 = vld [vmem:[%s3887_s3 + $0x84] ss:$16 sps:$4 sm:$0xff]  }
  0xba   : > { %1980 = vmatpush1.bf16.msra.mxu0 %v3006_v6  ;;  %2152 = vmatpush1.bf16.msra.mxu1 %v3007_v7  ;;  %v3022_v17 = vld [vmem:[%s3887_s3 + $0x8c] ss:$16 sps:$4 sm:$0xff]   ;;  %v3024_v18 = vld [vmem:[%s3887_s3 + $0x80] ss:$16 sps:$4 sm:$0xff]   ;;  %v3025_v19 = vld [vmem:[%s3887_s3 + $0x88] ss:$16 sps:$4 sm:$0xff]  }
  0xbb   : > { %1981 = vmatprep.subr.bf16.mxu0 %v3008_v8  ;;  %2153 = vmatprep.subr.bf16.mxu1 %v3010_v9  ;;  %v3026_v20 = vld [vmem:[%s3887_s3 + $0xa4] ss:$16 sps:$4 sm:$0xff]   ;;  %v3028_v21 = vld [vmem:[%s3887_s3 + $0xac] ss:$16 sps:$4 sm:$0xff]   ;;  %v3030_v22 = vld [vmem:[%s3887_s3 + $0xa0] ss:$16 sps:$4 sm:$0xff]  }
  0xbc   : > { %v3031_v23 = vld [vmem:[%s3887_s3 + $0xa8] ss:$16 sps:$4 sm:$0xff]   ;;  %v3032_v24 = vld [vmem:[%s3887_s3 + $0xc4] ss:$16 sps:$4 sm:$0xff]   ;;  %v3034_v25 = vld [vmem:[%s3887_s3 + $0xcc] ss:$16 sps:$4 sm:$0xff]  }
  0xbd   : > { %v3036_v26 = vld [vmem:[%s3887_s3 + $0xc0] ss:$16 sps:$4 sm:$0xff]   ;;  %v3037_v27 = vld [vmem:[%s3887_s3 + $0xc8] ss:$16 sps:$4 sm:$0xff]   ;;  %v3038_v28 = vld [vmem:[%s3887_s3 + $0xe4] ss:$16 sps:$4 sm:$0xff]  }
  0xbe   : > { %1982 = vmatpush1.bf16.msra.mxu0 %v3012_v10  ;;  %2154 = vmatpush1.bf16.msra.mxu1 %v3013_v11  ;;  %v3040_v29 = vld [vmem:[%s3887_s3 + $0xec] ss:$16 sps:$4 sm:$0xff]   ;;  %v3042_v30 = vld [vmem:[%s3887_s3 + $0xe0] ss:$16 sps:$4 sm:$0xff]   ;;  %v3043_v31 = vld [vmem:[%s3887_s3 + $0xe8] ss:$16 sps:$4 sm:$0xff]  }
  0xbf   : > { %1983 = vmatprep.subr.bf16.mxu0 %v3014_v12  ;;  %2155 = vmatprep.subr.bf16.mxu1 %v3016_v13  ;;  %v3044_v32 = vld [vmem:[%s3887_s3 + $0x104] ss:$16 sps:$4 sm:$0xff]   ;;  %v3046_v33 = vld [vmem:[%s3887_s3 + $0x10c] ss:$16 sps:$4 sm:$0xff]   ;;  %v3048_v34 = vld [vmem:[%s3887_s3 + $0x100] ss:$16 sps:$4 sm:$0xff]  }
  0xc0   : > { %v3049_v35 = vld [vmem:[%s3887_s3 + $0x108] ss:$16 sps:$4 sm:$0xff]   ;;  %v3050_v36 = vld [vmem:[%s3887_s3 + $0x124] ss:$16 sps:$4 sm:$0xff]   ;;  %v3052_v37 = vld [vmem:[%s3887_s3 + $0x12c] ss:$16 sps:$4 sm:$0xff]  }
  0xc1   : > { %v3054_v38 = vld [vmem:[%s3887_s3 + $0x120] ss:$16 sps:$4 sm:$0xff]   ;;  %v3055_v39 = vld [vmem:[%s3887_s3 + $0x128] ss:$16 sps:$4 sm:$0xff]   ;;  %v3056_v40 = vld [vmem:[%s3887_s3 + $0x144] ss:$16 sps:$4 sm:$0xff]  }
  0xc2   : > { %1984 = vmatpush1.bf16.msra.mxu0 %v3018_v14  ;;  %2156 = vmatpush1.bf16.msra.mxu1 %v3019_v15  ;;  %v3058_v41 = vld [vmem:[%s3887_s3 + $0x14c] ss:$16 sps:$4 sm:$0xff]   ;;  %v3060_v42 = vld [vmem:[%s3887_s3 + $0x140] ss:$16 sps:$4 sm:$0xff]   ;;  %v3061_v43 = vld [vmem:[%s3887_s3 + $0x148] ss:$16 sps:$4 sm:$0xff]  }
  0xc3   : > { %1985 = vmatprep.subr.bf16.mxu0 %v3020_v16  ;;  %2157 = vmatprep.subr.bf16.mxu1 %v3022_v17  ;;  %v3062_v44 = vld [vmem:[%s3887_s3 + $0x164] ss:$16 sps:$4 sm:$0xff]   ;;  %v3064_v45 = vld [vmem:[%s3887_s3 + $0x16c] ss:$16 sps:$4 sm:$0xff]   ;;  %v3066_v48 = vld [vmem:[%s3887_s3 + $0x160] ss:$16 sps:$4 sm:$0xff]  }
  0xc4   : > { %v371_v46 = vld [vmem:[#allocation2] sm:$0xff]  ;;  %v3067_v49 = vld [vmem:[%s3887_s3 + $0x168] ss:$16 sps:$4 sm:$0xff]   ;;  %v3070_v52 = vld [vmem:[%s3887_s3 + $0x18c] ss:$16 sps:$4 sm:$0xff]   ;;  %s2601_s26 = sshll.u32 %s3884_s8, 5 }
  0xc5   : > { %v375_v47 = vld [vmem:[#allocation2 + $0x20] sm:$0xff]  ;;  %v3073_v54 = vld [vmem:[%s3887_s3 + $0x188] ss:$16 sps:$4 sm:$0xff]   ;;  %v3076_v56 = vld [vmem:[%s3887_s3 + $0x1ac] ss:$16 sps:$4 sm:$0xff]   ;;  %s365_s20 = scalar_lea.vmem [#allocation11], %s2601_s26 }
  0xc6   : > { %1986 = vmatpush1.bf16.msra.mxu0 %v3024_v18  ;;  %2158 = vmatpush1.bf16.msra.mxu1 %v3025_v19  ;;  %v2603_v50 = vcombine.high %v371_v46, %v375_v47  ;;  %v3068_v51 = vld [vmem:[%s3887_s3 + $0x184] ss:$16 sps:$4 sm:$0xff]   ;;  %v3072_v53 = vld [vmem:[%s3887_s3 + $0x180] ss:$16 sps:$4 sm:$0xff]   ;;  %v3079_v58 = vld [vmem:[%s3887_s3 + $0x1a8] ss:$16 sps:$4 sm:$0xff]   ;;  %v2602_v5 = vcombine.low %v371_v46, %v375_v47 }
  0xc7   : > { %1987 = vmatprep.subr.bf16.mxu0 %v3026_v20  ;;  %2159 = vmatprep.subr.bf16.mxu1 %v3028_v21  ;;  %v3074_v55 = vld [vmem:[%s3887_s3 + $0x1a4] ss:$16 sps:$4 sm:$0xff]   ;;  %v3078_v57 = vld [vmem:[%s3887_s3 + $0x1a0] ss:$16 sps:$4 sm:$0xff]   ;;  %v3082_v60 = vld [vmem:[%s3887_s3 + $0x1cc] ss:$16 sps:$4 sm:$0xff]  }
  0xc8   : > { %2009 = vmatprep.mubr.bf16.mxu0 %v2603_v50  ;;  %2181 = vmatprep.mubr.bf16.mxu1 %v2603_v50  ;;  %v3080_v59 = vld [vmem:[%s3887_s3 + $0x1c4] ss:$16 sps:$4 sm:$0xff]   ;;  %v3084_v61 = vld [vmem:[%s3887_s3 + $0x1c0] ss:$16 sps:$4 sm:$0xff]   ;;  %v3085_v62 = vld [vmem:[%s3887_s3 + $0x1c8] ss:$16 sps:$4 sm:$0xff]  }
  0xc9   : > { %v3086_v63 = vld [vmem:[%s3887_s3 + $0x1e4] ss:$16 sps:$4 sm:$0xff]   ;;  %v3088_v0 = vld [vmem:[%s3887_s3 + $0x1ec] ss:$16 sps:$4 sm:$0xff]   ;;  %v3090_v1 = vld [vmem:[%s3887_s3 + $0x1e0] ss:$16 sps:$4 sm:$0xff]  }
  0xca   : > { %1988 = vmatpush1.bf16.msra.mxu0 %v3030_v22  ;;  %2160 = vmatpush1.bf16.msra.mxu1 %v3031_v23  ;;  %v3091_v2 = vld [vmem:[%s3887_s3 + $0x1e8] ss:$16 sps:$4 sm:$0xff]   ;;  %v3094_v3 = vld [vmem:[%s3887_s3 + $0x204] ss:$16 sps:$4 sm:$0xff]   ;;  %v3097_v4 = vld [vmem:[%s3887_s3 + $0x20c] ss:$16 sps:$4 sm:$0xff]  }
  0xcb   : > { %1989 = vmatprep.subr.bf16.mxu0 %v3032_v24  ;;  %2161 = vmatprep.subr.bf16.mxu1 %v3034_v25  ;;  %v3092_v6 = vld [vmem:[%s3887_s3 + $0x200] ss:$16 sps:$4 sm:$0xff]   ;;  %v3095_v7 = vld [vmem:[%s3887_s3 + $0x208] ss:$16 sps:$4 sm:$0xff]   ;;  %v3100_v8 = vld [vmem:[%s3887_s3 + $0x224] ss:$16 sps:$4 sm:$0xff]  }
  0xcc   : > { %v3103_v9 = vld [vmem:[%s3887_s3 + $0x22c] ss:$16 sps:$4 sm:$0xff]   ;;  %v3098_v10 = vld [vmem:[%s3887_s3 + $0x220] ss:$16 sps:$4 sm:$0xff]   ;;  %v3101_v11 = vld [vmem:[%s3887_s3 + $0x228] ss:$16 sps:$4 sm:$0xff]  }
  0xcd   : > { %v3106_v12 = vld [vmem:[%s3887_s3 + $0x244] ss:$16 sps:$4 sm:$0xff]   ;;  %v3109_v13 = vld [vmem:[%s3887_s3 + $0x24c] ss:$16 sps:$4 sm:$0xff]   ;;  %v3104_v14 = vld [vmem:[%s3887_s3 + $0x240] ss:$16 sps:$4 sm:$0xff]  }
  0xce   : > { %1990 = vmatpush1.bf16.msra.mxu0 %v3036_v26  ;;  %2162 = vmatpush1.bf16.msra.mxu1 %v3037_v27  ;;  %v3107_v15 = vld [vmem:[%s3887_s3 + $0x248] ss:$16 sps:$4 sm:$0xff]   ;;  %v3112_v16 = vld [vmem:[%s3887_s3 + $0x264] ss:$16 sps:$4 sm:$0xff]   ;;  %v3115_v17 = vld [vmem:[%s3887_s3 + $0x26c] ss:$16 sps:$4 sm:$0xff]  }
  0xcf   : > { %1991 = vmatprep.subr.bf16.mxu0 %v3038_v28  ;;  %2163 = vmatprep.subr.bf16.mxu1 %v3040_v29  ;;  %v3110_v18 = vld [vmem:[%s3887_s3 + $0x260] ss:$16 sps:$4 sm:$0xff]   ;;  %v3113_v19 = vld [vmem:[%s3887_s3 + $0x268] ss:$16 sps:$4 sm:$0xff]   ;;  %v3118_v20 = vld [vmem:[%s3887_s3 + $0x284] ss:$16 sps:$4 sm:$0xff]  }
  0xd0   : > { %v3121_v21 = vld [vmem:[%s3887_s3 + $0x28c] ss:$16 sps:$4 sm:$0xff]   ;;  %v3116_v22 = vld [vmem:[%s3887_s3 + $0x280] ss:$16 sps:$4 sm:$0xff]   ;;  %v3119_v23 = vld [vmem:[%s3887_s3 + $0x288] ss:$16 sps:$4 sm:$0xff]  }
  0xd1   : > { %v3124_v24 = vld [vmem:[%s3887_s3 + $0x2a4] ss:$16 sps:$4 sm:$0xff]   ;;  %v3127_v25 = vld [vmem:[%s3887_s3 + $0x2ac] ss:$16 sps:$4 sm:$0xff]   ;;  %v3122_v26 = vld [vmem:[%s3887_s3 + $0x2a0] ss:$16 sps:$4 sm:$0xff]  }
  0xd2   : > { %1992 = vmatpush1.bf16.msra.mxu0 %v3042_v30  ;;  %2164 = vmatpush1.bf16.msra.mxu1 %v3043_v31  ;;  %v3125_v27 = vld [vmem:[%s3887_s3 + $0x2a8] ss:$16 sps:$4 sm:$0xff]   ;;  %v3130_v28 = vld [vmem:[%s3887_s3 + $0x2c4] ss:$16 sps:$4 sm:$0xff]   ;;  %v3133_v29 = vld [vmem:[%s3887_s3 + $0x2cc] ss:$16 sps:$4 sm:$0xff]  }
  0xd3   : > { %1993 = vmatprep.subr.bf16.mxu0 %v3044_v32  ;;  %2165 = vmatprep.subr.bf16.mxu1 %v3046_v33  ;;  %v3992_v30 = vld [vmem:[#allocation2 + $0x8] sm:$0xff]  ;;  %v3128_v32 = vld [vmem:[%s3887_s3 + $0x2c0] ss:$16 sps:$4 sm:$0xff]   ;;  %v3154_v47 = vld [vmem:[%s3887_s3 + $0x344] ss:$16 sps:$4 sm:$0xff]   ;;  %s2431_s29 = sshll.u32 %s365_s20, 4  ;;  %s4189_s29 = int_to_ptr.vmem [resolvable:$true] %s2431_s29 }
  0xd4   : > { %v3994_v31 = vld [vmem:[#allocation2 + $0x28] sm:$0xff]  ;;  %s2883_s22 = sshll.u32 %s3765_s24, 8  ;;  %s2418_s24 = scalar_lea.sflag [#allocation4], %s3884_s8 }
  0xd5   : > { %v3131_v33 = vld [vmem:[%s3887_s3 + $0x2c8] ss:$16 sps:$4 sm:$0xff]   ;;  %s4194_s13 = scalar_lea.hbm %s4242_s5, %s2883_s22  ;;  %s3528_s11 = scalar_lea.vmem %s4189_s29, 512 }
  0xd6   : > { %1994 = vmatpush1.bf16.msra.mxu0 %v3048_v34  ;;  %2166 = vmatpush1.bf16.msra.mxu1 %v3049_v35  ;;  %v2605_v34 = vcombine.high %v3992_v30, %v3994_v31  ;;  %v3136_v35 = vld [vmem:[%s3887_s3 + $0x2e4] ss:$16 sps:$4 sm:$0xff]   ;;  %v3149_v46 = vld [vmem:[%s3887_s3 + $0x328] ss:$16 sps:$4 sm:$0xff]   ;;  %p3529_p5 = scmp.ne.s32.totalorder %s4189_s29, %s3528_s11  ;;  %p4280_p6 = scmp.ne.s32.totalorder %s4268_s23, 0 }
  0xd7   : > { %1995 = vmatprep.subr.bf16.mxu0 %v3050_v36  ;;  %2167 = vmatprep.subr.bf16.mxu1 %v3052_v37  ;;  %v3139_v36 = vld [vmem:[%s3887_s3 + $0x2ec] ss:$16 sps:$4 sm:$0xff]   ;;  %v3134_v37 = vld [vmem:[%s3887_s3 + $0x2e0] ss:$16 sps:$4 sm:$0xff]   ;;  %v3155_v50 = vld [vmem:[%s3887_s3 + $0x348] ss:$16 sps:$4 sm:$0xff]  }
  0xd8   : > { %p3530_p1 = pnand %p3529_p5, %p4280_p6  ;;  %s3614_s15 = smov [#allocation11]  }
  0xd9   : > { %s3532_s17 = sshll.u32 %s3614_s15, 4  ;;  %s3533_s17 = int_to_ptr.vmem [resolvable:$false] %s3532_s17 }
  0xda   : > { %1996 = vmatpush1.bf16.msra.mxu0 %v3054_v38  ;;  %2168 = vmatpush1.bf16.msra.mxu1 %v3055_v39  ;;  %v3137_v38 = vld [vmem:[%s3887_s3 + $0x2e8] ss:$16 sps:$4 sm:$0xff]   ;;  %v3142_v39 = vld [vmem:[%s3887_s3 + $0x304] ss:$16 sps:$4 sm:$0xff]   ;;  %p3531_p2 = pneg %p3530_p1  ;;  %s3534_s16 = scalar_lea.vmem %s3533_s17, 1024 }
  0xdb   : > { %1997 = vmatprep.subr.bf16.mxu0 %v3056_v40  ;;  %2169 = vmatprep.subr.bf16.mxu1 %v3058_v41  ;;  %v3145_v40 = vld [vmem:[%s3887_s3 + $0x30c] ss:$16 sps:$4 sm:$0xff]   ;;  %v3140_v41 = vld [vmem:[%s3887_s3 + $0x300] ss:$16 sps:$4 sm:$0xff]   ;;  %p3535_p3 = scmp.lt.s32.totalorder %s4189_s29, %s3533_s17  ;;  %p3536_p0 = scmp.lt.s32.totalorder %s3534_s16, %s3528_s11 }
  0xdd   : > { %p3537_p7 = por %p3536_p0, %p3535_p3 }
  0xde   : > { %1998 = vmatpush1.bf16.msra.mxu0 %v3060_v42  ;;  %2170 = vmatpush1.bf16.msra.mxu1 %v3061_v43  ;;  %v3143_v42 = vld [vmem:[%s3887_s3 + $0x308] ss:$16 sps:$4 sm:$0xff]   ;;  %v3148_v43 = vld [vmem:[%s3887_s3 + $0x324] ss:$16 sps:$4 sm:$0xff]  }
  0xdf   : > { %1999 = vmatprep.subr.bf16.mxu0 %v3062_v44  ;;  %2171 = vmatprep.subr.bf16.mxu1 %v3064_v45  ;;  %v3151_v44 = vld [vmem:[%s3887_s3 + $0x32c] ss:$16 sps:$4 sm:$0xff]   ;;  %v3146_v45 = vld [vmem:[%s3887_s3 + $0x320] ss:$16 sps:$4 sm:$0xff]   ;;  %p3538_p12 = pnand %p3537_p7, %p3531_p2 }
  0xe2   : > { %2000 = vmatpush1.bf16.msra.mxu0 %v3066_v48  ;;  %2172 = vmatpush1.bf16.msra.mxu1 %v3067_v49  ;;  %v3157_v48 = vld [vmem:[%s3887_s3 + $0x34c] ss:$16 sps:$4 sm:$0xff]   ;;  %v3152_v49 = vld [vmem:[%s3887_s3 + $0x340] ss:$16 sps:$4 sm:$0xff]  }
  0xe3   : > { %2001 = vmatprep.subr.bf16.mxu0 %v3068_v51  ;;  %2173 = vmatprep.subr.bf16.mxu1 %v3070_v52  ;;  %v3160_v51 = vld [vmem:[%s3887_s3 + $0x364] ss:$16 sps:$4 sm:$0xff]   ;;  %v3163_v52 = vld [vmem:[%s3887_s3 + $0x36c] ss:$16 sps:$4 sm:$0xff]  }
  0xe6   : > { %2002 = vmatpush1.bf16.msra.mxu0 %v3072_v53  ;;  %2174 = vmatpush1.bf16.msra.mxu1 %v3073_v54  ;;  %v3158_v53 = vld [vmem:[%s3887_s3 + $0x360] ss:$16 sps:$4 sm:$0xff]   ;;  %v3161_v54 = vld [vmem:[%s3887_s3 + $0x368] ss:$16 sps:$4 sm:$0xff]  }
  0xe7   : > { %2003 = vmatprep.subr.bf16.mxu0 %v3074_v55  ;;  %2175 = vmatprep.subr.bf16.mxu1 %v3076_v56  ;;  %v3166_v55 = vld [vmem:[%s3887_s3 + $0x384] ss:$16 sps:$4 sm:$0xff]   ;;  %v3169_v56 = vld [vmem:[%s3887_s3 + $0x38c] ss:$16 sps:$4 sm:$0xff]  }
  0xea   : > { %2004 = vmatpush1.bf16.msra.mxu0 %v3078_v57  ;;  %2176 = vmatpush1.bf16.msra.mxu1 %v3079_v58  ;;  %v3164_v57 = vld [vmem:[%s3887_s3 + $0x380] ss:$16 sps:$4 sm:$0xff]   ;;  %v3167_v58 = vld [vmem:[%s3887_s3 + $0x388] ss:$16 sps:$4 sm:$0xff]  }
  0xeb   : > { %2005 = vmatprep.subr.bf16.mxu0 %v3080_v59  ;;  %2177 = vmatprep.subr.bf16.mxu1 %v3082_v60  ;;  %v3172_v59 = vld [vmem:[%s3887_s3 + $0x3a4] ss:$16 sps:$4 sm:$0xff]   ;;  %v3175_v60 = vld [vmem:[%s3887_s3 + $0x3ac] ss:$16 sps:$4 sm:$0xff]  }
  0xee   : > { %2006 = vmatpush1.bf16.msra.mxu0 %v3084_v61  ;;  %2178 = vmatpush1.bf16.msra.mxu1 %v3085_v62  ;;  %v3170_v61 = vld [vmem:[%s3887_s3 + $0x3a0] ss:$16 sps:$4 sm:$0xff]   ;;  %v3173_v62 = vld [vmem:[%s3887_s3 + $0x3a8] ss:$16 sps:$4 sm:$0xff]  }
  0xef   : > { %2007 = vmatprep.subr.bf16.mxu0 %v3086_v63  ;;  %2179 = vmatprep.subr.bf16.mxu1 %v3088_v0  ;;  %v3178_v63 = vld [vmem:[%s3887_s3 + $0x3c4] ss:$16 sps:$4 sm:$0xff]   ;;  %v3181_v0 = vld [vmem:[%s3887_s3 + $0x3cc] ss:$16 sps:$4 sm:$0xff]  }
  0xf2   : > { %2008 = vmatpush1.bf16.msra.mxu0 %v3090_v1  ;;  %2180 = vmatpush1.bf16.msra.mxu1 %v3091_v2  ;;  %v3176_v1 = vld [vmem:[%s3887_s3 + $0x3c0] ss:$16 sps:$4 sm:$0xff]   ;;  %v3179_v2 = vld [vmem:[%s3887_s3 + $0x3c8] ss:$16 sps:$4 sm:$0xff]  }
  0xf3   : > { %2020 = vmatprep.subr.bf16.mxu0 %v3094_v3  ;;  %2192 = vmatprep.subr.bf16.mxu1 %v3097_v4  ;;  %v3184_v3 = vld [vmem:[%s3887_s3 + $0x3e4] ss:$16 sps:$4 sm:$0xff]   ;;  %v3187_v4 = vld [vmem:[%s3887_s3 + $0x3ec] ss:$16 sps:$4 sm:$0xff]  }
  0xf5   : > { %2010 = vmatmul.mubr.bf16.vlgmr.msra.gmra.mrb[0].mxu0 %v2602_v5  ;;  %2182 = vmatmul.mubr.bf16.vlgmr.msra.gmra.mrb[0].mxu1 %v2602_v5  ;;  %v3182_v5 = vld [vmem:[%s3887_s3 + $0x3e0] ss:$16 sps:$4 sm:$0xff]  }
  0xf6   : > { %2021 = vmatpush1.bf16.msra.mxu0 %v3092_v6  ;;  %2193 = vmatpush1.bf16.msra.mxu1 %v3095_v7  ;;  %v3185_v6 = vld [vmem:[%s3887_s3 + $0x3e8] ss:$16 sps:$4 sm:$0xff]   ;;  %v3190_v7 = vld [vmem:[%s3887_s3 + $0x404] ss:$16 sps:$4 sm:$0xff]  }
  0xf7   : > { %2022 = vmatprep.subr.bf16.mxu0 %v3100_v8  ;;  %2194 = vmatprep.subr.bf16.mxu1 %v3103_v9  ;;  %v3193_v8 = vld [vmem:[%s3887_s3 + $0x40c] ss:$16 sps:$4 sm:$0xff]   ;;  %v2604_v9 = vcombine.low %v3992_v30, %v3994_v31  ;;  %v3215_v30 = vld [vmem:[%s3887_s3 + $0x488] ss:$16 sps:$4 sm:$0xff]   ;;  %v3220_v31 = vld [vmem:[%s3887_s3 + $0x4a4] ss:$16 sps:$4 sm:$0xff]  }
  0xf8   : > { %2052 = vmatprep.mubr.bf16.mxu0 %v2605_v34  ;;  %2224 = vmatprep.mubr.bf16.mxu1 %v2605_v34  ;;  %v3221_v34 = vld [vmem:[%s3887_s3 + $0x4a8] ss:$16 sps:$4 sm:$0xff]  }
  0xfa   : > { %2023 = vmatpush1.bf16.msra.mxu0 %v3098_v10  ;;  %2195 = vmatpush1.bf16.msra.mxu1 %v3101_v11  ;;  %v3188_v10 = vld [vmem:[%s3887_s3 + $0x400] ss:$16 sps:$4 sm:$0xff]   ;;  %v3191_v11 = vld [vmem:[%s3887_s3 + $0x408] ss:$16 sps:$4 sm:$0xff]  }
  0xfb   : > { %2024 = vmatprep.subr.bf16.mxu0 %v3106_v12  ;;  %2196 = vmatprep.subr.bf16.mxu1 %v3109_v13  ;;  %v3196_v12 = vld [vmem:[%s3887_s3 + $0x424] ss:$16 sps:$4 sm:$0xff]   ;;  %v3199_v13 = vld [vmem:[%s3887_s3 + $0x42c] ss:$16 sps:$4 sm:$0xff]  }
  0xfe   : > { %2025 = vmatpush1.bf16.msra.mxu0 %v3104_v14  ;;  %2197 = vmatpush1.bf16.msra.mxu1 %v3107_v15  ;;  %v4044_v14 = vld [vmem:[#allocation2 + $0x10] sm:$0xff] }
  0xff   : > { %2026 = vmatprep.subr.bf16.mxu0 %v3112_v16  ;;  %2198 = vmatprep.subr.bf16.mxu1 %v3115_v17  ;;  %v4046_v15 = vld [vmem:[#allocation2 + $0x30] sm:$0xff] }
 0x100   : > { %v2607_v16 = vcombine.high %v4044_v14, %v4046_v15  ;;  %v3194_v17 = vld [vmem:[%s3887_s3 + $0x420] ss:$16 sps:$4 sm:$0xff]  }
 0x102   : > { %2027 = vmatpush1.bf16.msra.mxu0 %v3110_v18  ;;  %2199 = vmatpush1.bf16.msra.mxu1 %v3113_v19  ;;  %v3197_v18 = vld [vmem:[%s3887_s3 + $0x428] ss:$16 sps:$4 sm:$0xff]   ;;  %v3202_v19 = vld [vmem:[%s3887_s3 + $0x444] ss:$16 sps:$4 sm:$0xff]  }
 0x103   : > { %2028 = vmatprep.subr.bf16.mxu0 %v3118_v20  ;;  %2200 = vmatprep.subr.bf16.mxu1 %v3121_v21  ;;  %v3205_v20 = vld [vmem:[%s3887_s3 + $0x44c] ss:$16 sps:$4 sm:$0xff]   ;;  %v3200_v21 = vld [vmem:[%s3887_s3 + $0x440] ss:$16 sps:$4 sm:$0xff]  }
 0x106   : > { %2029 = vmatpush1.bf16.msra.mxu0 %v3116_v22  ;;  %2201 = vmatpush1.bf16.msra.mxu1 %v3119_v23  ;;  %v3203_v22 = vld [vmem:[%s3887_s3 + $0x448] ss:$16 sps:$4 sm:$0xff]   ;;  %v3208_v23 = vld [vmem:[%s3887_s3 + $0x464] ss:$16 sps:$4 sm:$0xff]  }
 0x107   : > { %2030 = vmatprep.subr.bf16.mxu0 %v3124_v24  ;;  %2202 = vmatprep.subr.bf16.mxu1 %v3127_v25  ;;  %v3211_v24 = vld [vmem:[%s3887_s3 + $0x46c] ss:$16 sps:$4 sm:$0xff]   ;;  %v3206_v25 = vld [vmem:[%s3887_s3 + $0x460] ss:$16 sps:$4 sm:$0xff]  }
 0x10a   : > { %2031 = vmatpush1.bf16.msra.mxu0 %v3122_v26  ;;  %2203 = vmatpush1.bf16.msra.mxu1 %v3125_v27  ;;  %v3209_v26 = vld [vmem:[%s3887_s3 + $0x468] ss:$16 sps:$4 sm:$0xff]   ;;  %v3214_v27 = vld [vmem:[%s3887_s3 + $0x484] ss:$16 sps:$4 sm:$0xff]  }
 0x10b   : > { %2032 = vmatprep.subr.bf16.mxu0 %v3130_v28  ;;  %2204 = vmatprep.subr.bf16.mxu1 %v3133_v29  ;;  %v3217_v28 = vld [vmem:[%s3887_s3 + $0x48c] ss:$16 sps:$4 sm:$0xff]   ;;  %v3212_v29 = vld [vmem:[%s3887_s3 + $0x480] ss:$16 sps:$4 sm:$0xff]  }
 0x10e   : > { %2033 = vmatpush1.bf16.msra.mxu0 %v3128_v32  ;;  %2205 = vmatpush1.bf16.msra.mxu1 %v3131_v33  ;;  %v3223_v32 = vld [vmem:[%s3887_s3 + $0x4ac] ss:$16 sps:$4 sm:$0xff]   ;;  %v3218_v33 = vld [vmem:[%s3887_s3 + $0x4a0] ss:$16 sps:$4 sm:$0xff]  }
 0x10f   : > { %2034 = vmatprep.subr.bf16.mxu0 %v3136_v35  ;;  %2206 = vmatprep.subr.bf16.mxu1 %v3139_v36  ;;  %v3226_v35 = vld [vmem:[%s3887_s3 + $0x4c4] ss:$16 sps:$4 sm:$0xff]   ;;  %v3229_v36 = vld [vmem:[%s3887_s3 + $0x4cc] ss:$16 sps:$4 sm:$0xff]  }
 0x112   : > { %2035 = vmatpush1.bf16.msra.mxu0 %v3134_v37  ;;  %2207 = vmatpush1.bf16.msra.mxu1 %v3137_v38  ;;  %v3224_v37 = vld [vmem:[%s3887_s3 + $0x4c0] ss:$16 sps:$4 sm:$0xff]   ;;  %v3227_v38 = vld [vmem:[%s3887_s3 + $0x4c8] ss:$16 sps:$4 sm:$0xff]  }
 0x113   : > { %2036 = vmatprep.subr.bf16.mxu0 %v3142_v39  ;;  %2208 = vmatprep.subr.bf16.mxu1 %v3145_v40  ;;  %v3232_v39 = vld [vmem:[%s3887_s3 + $0x4e4] ss:$16 sps:$4 sm:$0xff]   ;;  %v3235_v40 = vld [vmem:[%s3887_s3 + $0x4ec] ss:$16 sps:$4 sm:$0xff]  }
 0x116   : > { %2037 = vmatpush1.bf16.msra.mxu0 %v3140_v41  ;;  %2209 = vmatpush1.bf16.msra.mxu1 %v3143_v42  ;;  %v3230_v41 = vld [vmem:[%s3887_s3 + $0x4e0] ss:$16 sps:$4 sm:$0xff]   ;;  %v3233_v42 = vld [vmem:[%s3887_s3 + $0x4e8] ss:$16 sps:$4 sm:$0xff]  }
 0x117   : > { %2038 = vmatprep.subr.bf16.mxu0 %v3148_v43  ;;  %2210 = vmatprep.subr.bf16.mxu1 %v3151_v44  ;;  %v3238_v43 = vld [vmem:[%s3887_s3 + $0x504] ss:$16 sps:$4 sm:$0xff]   ;;  %v3241_v44 = vld [vmem:[%s3887_s3 + $0x50c] ss:$16 sps:$4 sm:$0xff]  }
 0x11a   : > { %2039 = vmatpush1.bf16.msra.mxu0 %v3146_v45  ;;  %2211 = vmatpush1.bf16.msra.mxu1 %v3149_v46  ;;  %v3236_v45 = vld [vmem:[%s3887_s3 + $0x500] ss:$16 sps:$4 sm:$0xff]   ;;  %v3239_v46 = vld [vmem:[%s3887_s3 + $0x508] ss:$16 sps:$4 sm:$0xff]  }
 0x11b   : > { %2040 = vmatprep.subr.bf16.mxu0 %v3154_v47  ;;  %2212 = vmatprep.subr.bf16.mxu1 %v3157_v48  ;;  %v3244_v47 = vld [vmem:[%s3887_s3 + $0x524] ss:$16 sps:$4 sm:$0xff]   ;;  %v3247_v48 = vld [vmem:[%s3887_s3 + $0x52c] ss:$16 sps:$4 sm:$0xff]  }
 0x11e   : > { %2041 = vmatpush1.bf16.msra.mxu0 %v3152_v49  ;;  %2213 = vmatpush1.bf16.msra.mxu1 %v3155_v50  ;;  %v3242_v49 = vld [vmem:[%s3887_s3 + $0x520] ss:$16 sps:$4 sm:$0xff]   ;;  %v3245_v50 = vld [vmem:[%s3887_s3 + $0x528] ss:$16 sps:$4 sm:$0xff]  }
 0x11f   : > { %2042 = vmatprep.subr.bf16.mxu0 %v3160_v51  ;;  %2214 = vmatprep.subr.bf16.mxu1 %v3163_v52  ;;  %v3250_v51 = vld [vmem:[%s3887_s3 + $0x544] ss:$16 sps:$4 sm:$0xff]   ;;  %v3253_v52 = vld [vmem:[%s3887_s3 + $0x54c] ss:$16 sps:$4 sm:$0xff]  }
 0x122   : > { %2043 = vmatpush1.bf16.msra.mxu0 %v3158_v53  ;;  %2215 = vmatpush1.bf16.msra.mxu1 %v3161_v54  ;;  %v3248_v53 = vld [vmem:[%s3887_s3 + $0x540] ss:$16 sps:$4 sm:$0xff]   ;;  %v3251_v54 = vld [vmem:[%s3887_s3 + $0x548] ss:$16 sps:$4 sm:$0xff]  }
 0x123   : > { %2044 = vmatprep.subr.bf16.mxu0 %v3166_v55  ;;  %2216 = vmatprep.subr.bf16.mxu1 %v3169_v56  ;;  %v3256_v55 = vld [vmem:[%s3887_s3 + $0x564] ss:$16 sps:$4 sm:$0xff]   ;;  %v3259_v56 = vld [vmem:[%s3887_s3 + $0x56c] ss:$16 sps:$4 sm:$0xff]  }
 0x126   : > { %2045 = vmatpush1.bf16.msra.mxu0 %v3164_v57  ;;  %2217 = vmatpush1.bf16.msra.mxu1 %v3167_v58  ;;  %v3254_v57 = vld [vmem:[%s3887_s3 + $0x560] ss:$16 sps:$4 sm:$0xff]   ;;  %v3257_v58 = vld [vmem:[%s3887_s3 + $0x568] ss:$16 sps:$4 sm:$0xff]  }
 0x127   : > { %2046 = vmatprep.subr.bf16.mxu0 %v3172_v59  ;;  %2218 = vmatprep.subr.bf16.mxu1 %v3175_v60  ;;  %v3262_v59 = vld [vmem:[%s3887_s3 + $0x584] ss:$16 sps:$4 sm:$0xff]   ;;  %v3265_v60 = vld [vmem:[%s3887_s3 + $0x58c] ss:$16 sps:$4 sm:$0xff]  }
 0x12a   : > { %2047 = vmatpush1.bf16.msra.mxu0 %v3170_v61  ;;  %2219 = vmatpush1.bf16.msra.mxu1 %v3173_v62  ;;  %v3260_v61 = vld [vmem:[%s3887_s3 + $0x580] ss:$16 sps:$4 sm:$0xff]   ;;  %v3263_v62 = vld [vmem:[%s3887_s3 + $0x588] ss:$16 sps:$4 sm:$0xff]  }
 0x12b   : > { %2048 = vmatprep.subr.bf16.mxu0 %v3178_v63  ;;  %2220 = vmatprep.subr.bf16.mxu1 %v3181_v0  ;;  %v3268_v63 = vld [vmem:[%s3887_s3 + $0x5a4] ss:$16 sps:$4 sm:$0xff]   ;;  %v3271_v0 = vld [vmem:[%s3887_s3 + $0x5ac] ss:$16 sps:$4 sm:$0xff]  }
 0x12e   : > { %2049 = vmatpush1.bf16.msra.mxu0 %v3176_v1  ;;  %2221 = vmatpush1.bf16.msra.mxu1 %v3179_v2  ;;  %v3266_v1 = vld [vmem:[%s3887_s3 + $0x5a0] ss:$16 sps:$4 sm:$0xff]   ;;  %v3269_v2 = vld [vmem:[%s3887_s3 + $0x5a8] ss:$16 sps:$4 sm:$0xff]  }
 0x12f   : > { %2050 = vmatprep.subr.bf16.mxu0 %v3184_v3  ;;  %2222 = vmatprep.subr.bf16.mxu1 %v3187_v4  ;;  %v3274_v3 = vld [vmem:[%s3887_s3 + $0x5c4] ss:$16 sps:$4 sm:$0xff]   ;;  %v3277_v4 = vld [vmem:[%s3887_s3 + $0x5cc] ss:$16 sps:$4 sm:$0xff]  }
 0x132   : > { %2051 = vmatpush1.bf16.msra.mxu0 %v3182_v5  ;;  %2223 = vmatpush1.bf16.msra.mxu1 %v3185_v6  ;;  %v3272_v5 = vld [vmem:[%s3887_s3 + $0x5c0] ss:$16 sps:$4 sm:$0xff]   ;;  %v3275_v6 = vld [vmem:[%s3887_s3 + $0x5c8] ss:$16 sps:$4 sm:$0xff]  }
 0x133   : > { %2063 = vmatprep.subr.bf16.mxu0 %v3190_v7  ;;  %2235 = vmatprep.subr.bf16.mxu1 %v3193_v8  ;;  %v3280_v7 = vld [vmem:[%s3887_s3 + $0x5e4] ss:$16 sps:$4 sm:$0xff]   ;;  %v3283_v8 = vld [vmem:[%s3887_s3 + $0x5ec] ss:$16 sps:$4 sm:$0xff]  }
 0x135   : > { %2053 = vmatmul.mubr.bf16.vlgmr.msra.gmra.mrb[0].mxu0 %v2604_v9  ;;  %2225 = vmatmul.mubr.bf16.vlgmr.msra.gmra.mrb[0].mxu1 %v2604_v9  ;;  %v3278_v9 = vld [vmem:[%s3887_s3 + $0x5e0] ss:$16 sps:$4 sm:$0xff]  }
 0x136   : > { %2064 = vmatpush1.bf16.msra.mxu0 %v3188_v10  ;;  %2236 = vmatpush1.bf16.msra.mxu1 %v3191_v11  ;;  %v3281_v10 = vld [vmem:[%s3887_s3 + $0x5e8] ss:$16 sps:$4 sm:$0xff]   ;;  %v3286_v11 = vld [vmem:[%s3887_s3 + $0x604] ss:$16 sps:$4 sm:$0xff]  }
 0x137   : > { %2065 = vmatprep.subr.bf16.mxu0 %v3196_v12  ;;  %2237 = vmatprep.subr.bf16.mxu1 %v3199_v13  ;;  %v3289_v12 = vld [vmem:[%s3887_s3 + $0x60c] ss:$16 sps:$4 sm:$0xff]   ;;  %v2606_v13 = vcombine.low %v4044_v14, %v4046_v15  ;;  %v3290_v15 = vld [vmem:[%s3887_s3 + $0x620] ss:$16 sps:$4 sm:$0xff]  }
 0x138   : > { %2095 = vmatprep.mubr.bf16.mxu0 %v2607_v16  ;;  %2267 = vmatprep.mubr.bf16.mxu1 %v2607_v16  ;;  %v4112_v16 = vld [vmem:[#allocation2 + $0x18] sm:$0xff] }
 0x13a   : > { %2066 = vmatpush1.bf16.msra.mxu0 %v3194_v17  ;;  %2238 = vmatpush1.bf16.msra.mxu1 %v3197_v18  ;;  %v4114_v17 = vld [vmem:[#allocation2 + $0x38] sm:$0xff]  ;;  %v3284_v18 = vld [vmem:[%s3887_s3 + $0x600] ss:$16 sps:$4 sm:$0xff]  }
 0x13b   : > { %2067 = vmatprep.subr.bf16.mxu0 %v3202_v19  ;;  %2239 = vmatprep.subr.bf16.mxu1 %v3205_v20  ;;  %v3287_v19 = vld [vmem:[%s3887_s3 + $0x608] ss:$16 sps:$4 sm:$0xff]   ;;  %v3292_v20 = vld [vmem:[%s3887_s3 + $0x624] ss:$16 sps:$4 sm:$0xff]   ;;  %v2609_v14 = vcombine.high %v4112_v16, %v4114_v17 }
 0x13e   : > { %2068 = vmatpush1.bf16.msra.mxu0 %v3200_v21  ;;  %2240 = vmatpush1.bf16.msra.mxu1 %v3203_v22  ;;  %v3295_v21 = vld [vmem:[%s3887_s3 + $0x62c] ss:$16 sps:$4 sm:$0xff]   ;;  %v3293_v22 = vld [vmem:[%s3887_s3 + $0x628] ss:$16 sps:$4 sm:$0xff]  }
 0x13f   : > { %2069 = vmatprep.subr.bf16.mxu0 %v3208_v23  ;;  %2241 = vmatprep.subr.bf16.mxu1 %v3211_v24  ;;  %v3298_v23 = vld [vmem:[%s3887_s3 + $0x644] ss:$16 sps:$4 sm:$0xff]   ;;  %v3301_v24 = vld [vmem:[%s3887_s3 + $0x64c] ss:$16 sps:$4 sm:$0xff]  }
 0x142   : > { %2070 = vmatpush1.bf16.msra.mxu0 %v3206_v25  ;;  %2242 = vmatpush1.bf16.msra.mxu1 %v3209_v26  ;;  %v3296_v25 = vld [vmem:[%s3887_s3 + $0x640] ss:$16 sps:$4 sm:$0xff]   ;;  %v3299_v26 = vld [vmem:[%s3887_s3 + $0x648] ss:$16 sps:$4 sm:$0xff]  }
 0x143   : > { %2071 = vmatprep.subr.bf16.mxu0 %v3214_v27  ;;  %2243 = vmatprep.subr.bf16.mxu1 %v3217_v28  ;;  %v3304_v27 = vld [vmem:[%s3887_s3 + $0x664] ss:$16 sps:$4 sm:$0xff]   ;;  %v3307_v28 = vld [vmem:[%s3887_s3 + $0x66c] ss:$16 sps:$4 sm:$0xff]  }
 0x146   : > { %2072 = vmatpush1.bf16.msra.mxu0 %v3212_v29  ;;  %2244 = vmatpush1.bf16.msra.mxu1 %v3215_v30  ;;  %v3302_v29 = vld [vmem:[%s3887_s3 + $0x660] ss:$16 sps:$4 sm:$0xff]   ;;  %v3305_v30 = vld [vmem:[%s3887_s3 + $0x668] ss:$16 sps:$4 sm:$0xff]  }
 0x147   : > { %2073 = vmatprep.subr.bf16.mxu0 %v3220_v31  ;;  %2245 = vmatprep.subr.bf16.mxu1 %v3223_v32  ;;  %v3310_v31 = vld [vmem:[%s3887_s3 + $0x684] ss:$16 sps:$4 sm:$0xff]   ;;  %v3313_v32 = vld [vmem:[%s3887_s3 + $0x68c] ss:$16 sps:$4 sm:$0xff]  }
 0x14a   : > { %2074 = vmatpush1.bf16.msra.mxu0 %v3218_v33  ;;  %2246 = vmatpush1.bf16.msra.mxu1 %v3221_v34  ;;  %v3308_v33 = vld [vmem:[%s3887_s3 + $0x680] ss:$16 sps:$4 sm:$0xff]   ;;  %v3311_v34 = vld [vmem:[%s3887_s3 + $0x688] ss:$16 sps:$4 sm:$0xff]  }
 0x14b   : > { %2075 = vmatprep.subr.bf16.mxu0 %v3226_v35  ;;  %2247 = vmatprep.subr.bf16.mxu1 %v3229_v36  ;;  %v3316_v35 = vld [vmem:[%s3887_s3 + $0x6a4] ss:$16 sps:$4 sm:$0xff]   ;;  %v3319_v36 = vld [vmem:[%s3887_s3 + $0x6ac] ss:$16 sps:$4 sm:$0xff]  }
 0x14e   : > { %2076 = vmatpush1.bf16.msra.mxu0 %v3224_v37  ;;  %2248 = vmatpush1.bf16.msra.mxu1 %v3227_v38  ;;  %v3314_v37 = vld [vmem:[%s3887_s3 + $0x6a0] ss:$16 sps:$4 sm:$0xff]   ;;  %v3317_v38 = vld [vmem:[%s3887_s3 + $0x6a8] ss:$16 sps:$4 sm:$0xff]  }
 0x14f   : > { %2077 = vmatprep.subr.bf16.mxu0 %v3232_v39  ;;  %2249 = vmatprep.subr.bf16.mxu1 %v3235_v40  ;;  %v3322_v39 = vld [vmem:[%s3887_s3 + $0x6c4] ss:$16 sps:$4 sm:$0xff]   ;;  %v3325_v40 = vld [vmem:[%s3887_s3 + $0x6cc] ss:$16 sps:$4 sm:$0xff]  }
 0x152   : > { %2078 = vmatpush1.bf16.msra.mxu0 %v3230_v41  ;;  %2250 = vmatpush1.bf16.msra.mxu1 %v3233_v42  ;;  %v3320_v41 = vld [vmem:[%s3887_s3 + $0x6c0] ss:$16 sps:$4 sm:$0xff]   ;;  %v3323_v42 = vld [vmem:[%s3887_s3 + $0x6c8] ss:$16 sps:$4 sm:$0xff]  }
 0x153   : > { %2079 = vmatprep.subr.bf16.mxu0 %v3238_v43  ;;  %2251 = vmatprep.subr.bf16.mxu1 %v3241_v44  ;;  %v3328_v43 = vld [vmem:[%s3887_s3 + $0x6e4] ss:$16 sps:$4 sm:$0xff]   ;;  %v3331_v44 = vld [vmem:[%s3887_s3 + $0x6ec] ss:$16 sps:$4 sm:$0xff]  }
 0x156   : > { %2080 = vmatpush1.bf16.msra.mxu0 %v3236_v45  ;;  %2252 = vmatpush1.bf16.msra.mxu1 %v3239_v46  ;;  %v3326_v45 = vld [vmem:[%s3887_s3 + $0x6e0] ss:$16 sps:$4 sm:$0xff]   ;;  %v3329_v46 = vld [vmem:[%s3887_s3 + $0x6e8] ss:$16 sps:$4 sm:$0xff]  }
 0x157   : > { %2081 = vmatprep.subr.bf16.mxu0 %v3244_v47  ;;  %2253 = vmatprep.subr.bf16.mxu1 %v3247_v48  ;;  %v3334_v47 = vld [vmem:[%s3887_s3 + $0x704] ss:$16 sps:$4 sm:$0xff]   ;;  %v3337_v48 = vld [vmem:[%s3887_s3 + $0x70c] ss:$16 sps:$4 sm:$0xff]  }
 0x15a   : > { %2082 = vmatpush1.bf16.msra.mxu0 %v3242_v49  ;;  %2254 = vmatpush1.bf16.msra.mxu1 %v3245_v50  ;;  %v3332_v49 = vld [vmem:[%s3887_s3 + $0x700] ss:$16 sps:$4 sm:$0xff]   ;;  %v3335_v50 = vld [vmem:[%s3887_s3 + $0x708] ss:$16 sps:$4 sm:$0xff]  }
 0x15b   : > { %2083 = vmatprep.subr.bf16.mxu0 %v3250_v51  ;;  %2255 = vmatprep.subr.bf16.mxu1 %v3253_v52  ;;  %v3340_v51 = vld [vmem:[%s3887_s3 + $0x724] ss:$16 sps:$4 sm:$0xff]   ;;  %v3343_v52 = vld [vmem:[%s3887_s3 + $0x72c] ss:$16 sps:$4 sm:$0xff]  }
 0x15e   : > { %2084 = vmatpush1.bf16.msra.mxu0 %v3248_v53  ;;  %2256 = vmatpush1.bf16.msra.mxu1 %v3251_v54  ;;  %v3338_v53 = vld [vmem:[%s3887_s3 + $0x720] ss:$16 sps:$4 sm:$0xff]   ;;  %v3341_v54 = vld [vmem:[%s3887_s3 + $0x728] ss:$16 sps:$4 sm:$0xff]  }
 0x15f   : > { %2085 = vmatprep.subr.bf16.mxu0 %v3256_v55  ;;  %2257 = vmatprep.subr.bf16.mxu1 %v3259_v56  ;;  %v3346_v55 = vld [vmem:[%s3887_s3 + $0x744] ss:$16 sps:$4 sm:$0xff]   ;;  %v3349_v56 = vld [vmem:[%s3887_s3 + $0x74c] ss:$16 sps:$4 sm:$0xff]  }
 0x162   : > { %2086 = vmatpush1.bf16.msra.mxu0 %v3254_v57  ;;  %2258 = vmatpush1.bf16.msra.mxu1 %v3257_v58  ;;  %v3344_v57 = vld [vmem:[%s3887_s3 + $0x740] ss:$16 sps:$4 sm:$0xff]   ;;  %v3347_v58 = vld [vmem:[%s3887_s3 + $0x748] ss:$16 sps:$4 sm:$0xff]  }
 0x163   : > { %2087 = vmatprep.subr.bf16.mxu0 %v3262_v59  ;;  %2259 = vmatprep.subr.bf16.mxu1 %v3265_v60  ;;  %v3352_v59 = vld [vmem:[%s3887_s3 + $0x764] ss:$16 sps:$4 sm:$0xff]   ;;  %v3355_v60 = vld [vmem:[%s3887_s3 + $0x76c] ss:$16 sps:$4 sm:$0xff]  }
 0x166   : > { %2088 = vmatpush1.bf16.msra.mxu0 %v3260_v61  ;;  %2260 = vmatpush1.bf16.msra.mxu1 %v3263_v62  ;;  %v3350_v61 = vld [vmem:[%s3887_s3 + $0x760] ss:$16 sps:$4 sm:$0xff]   ;;  %v3353_v62 = vld [vmem:[%s3887_s3 + $0x768] ss:$16 sps:$4 sm:$0xff]  }
 0x167   : > { %2089 = vmatprep.subr.bf16.mxu0 %v3268_v63  ;;  %2261 = vmatprep.subr.bf16.mxu1 %v3271_v0  ;;  %v3358_v63 = vld [vmem:[%s3887_s3 + $0x784] ss:$16 sps:$4 sm:$0xff]   ;;  %v3361_v0 = vld [vmem:[%s3887_s3 + $0x78c] ss:$16 sps:$4 sm:$0xff]  }
 0x16a   : > { %2090 = vmatpush1.bf16.msra.mxu0 %v3266_v1  ;;  %2262 = vmatpush1.bf16.msra.mxu1 %v3269_v2  ;;  %v3356_v1 = vld [vmem:[%s3887_s3 + $0x780] ss:$16 sps:$4 sm:$0xff]   ;;  %v3359_v2 = vld [vmem:[%s3887_s3 + $0x788] ss:$16 sps:$4 sm:$0xff]  }
 0x16b   : > { %2091 = vmatprep.subr.bf16.mxu0 %v3274_v3  ;;  %2263 = vmatprep.subr.bf16.mxu1 %v3277_v4  ;;  %v3364_v3 = vld [vmem:[%s3887_s3 + $0x7a4] ss:$16 sps:$4 sm:$0xff]   ;;  %v3367_v4 = vld [vmem:[%s3887_s3 + $0x7ac] ss:$16 sps:$4 sm:$0xff]  }
 0x16e   : > { %2092 = vmatpush1.bf16.msra.mxu0 %v3272_v5  ;;  %2264 = vmatpush1.bf16.msra.mxu1 %v3275_v6  ;;  %v3362_v5 = vld [vmem:[%s3887_s3 + $0x7a0] ss:$16 sps:$4 sm:$0xff]   ;;  %v3365_v6 = vld [vmem:[%s3887_s3 + $0x7a8] ss:$16 sps:$4 sm:$0xff]  }
 0x16f   : > { %2093 = vmatprep.subr.bf16.mxu0 %v3280_v7  ;;  %2265 = vmatprep.subr.bf16.mxu1 %v3283_v8  ;;  %v3370_v7 = vld [vmem:[%s3887_s3 + $0x7c4] ss:$16 sps:$4 sm:$0xff]   ;;  %v3373_v8 = vld [vmem:[%s3887_s3 + $0x7cc] ss:$16 sps:$4 sm:$0xff]  }
 0x172   : > { %2094 = vmatpush1.bf16.msra.mxu0 %v3278_v9  ;;  %2266 = vmatpush1.bf16.msra.mxu1 %v3281_v10  ;;  %v3368_v9 = vld [vmem:[%s3887_s3 + $0x7c0] ss:$16 sps:$4 sm:$0xff]   ;;  %v3371_v10 = vld [vmem:[%s3887_s3 + $0x7c8] ss:$16 sps:$4 sm:$0xff]  }
 0x173   : > { %2106 = vmatprep.subr.bf16.mxu0 %v3286_v11  ;;  %2278 = vmatprep.subr.bf16.mxu1 %v3289_v12  ;;  %v3376_v11 = vld [vmem:[%s3887_s3 + $0x7e4] ss:$16 sps:$4 sm:$0xff]   ;;  %v3379_v12 = vld [vmem:[%s3887_s3 + $0x7ec] ss:$16 sps:$4 sm:$0xff]  }
 0x175   : > { %2096 = vmatmul.mubr.bf16.vlgmr.msra.gmra.mrb[0].mxu0 %v2606_v13  ;;  %2268 = vmatmul.mubr.bf16.vlgmr.msra.gmra.mrb[0].mxu1 %v2606_v13  ;;  %v3374_v13 = vld [vmem:[%s3887_s3 + $0x7e0] ss:$16 sps:$4 sm:$0xff]  }
 0x176   : > { %2107 = vmatpush1.bf16.msra.mxu0 %v3284_v18  ;;  %2279 = vmatpush1.bf16.msra.mxu1 %v3287_v19  ;;  %v3377_v18 = vld [vmem:[%s3887_s3 + $0x7e8] ss:$16 sps:$4 sm:$0xff]   ;;  %v2608_v19 = vcombine.low %v4112_v16, %v4114_v17 }
 0x177   : > { %2108 = vmatprep.subr.bf16.mxu0 %v3292_v20  ;;  %2280 = vmatprep.subr.bf16.mxu1 %v3295_v21  ;;  %v637_v20 = vlaneseq }
 0x178   : > { %2138 = vmatprep.mubr.bf16.mxu0 %v2609_v14  ;;  %2310 = vmatprep.mubr.bf16.mxu1 %v2609_v14 }
 0x179   : > { %v638_v21 = vshrl.u32 %v637_v20, 7 }
 0x17a   : > { %2109 = vmatpush1.bf16.msra.mxu0 %v3290_v15  ;;  %2281 = vmatpush1.bf16.msra.mxu1 %v3293_v22  ;;  %v635_v22 = vld [vmem:[%s306_s9] sm:$0xf] }
 0x17b   : > { %2110 = vmatprep.subr.bf16.mxu0 %v3298_v23  ;;  %2282 = vmatprep.subr.bf16.mxu1 %v3301_v24  ;;  %v639_v14 = vsub.s32 0, %v638_v21  ;;  %v647_v15 = vsub.s32 2, %v638_v21  ;;  %v643_v23 = vsub.s32 1, %v638_v21  ;;  %v651_v24 = vsub.s32 3, %v638_v21 }
 0x17d   : > { %v644_v16 = vrot.slane %v635_v22, %v643_v23  ;;  %v652_v17 = vrot.slane %v635_v22, %v651_v24 }
 0x17e   : > { %2111 = vmatpush1.bf16.msra.mxu0 %v3296_v25  ;;  %2283 = vmatpush1.bf16.msra.mxu1 %v3299_v26  ;;  %v640_v25 = vrot.slane %v635_v22, %v639_v14  ;;  %v2329_v26 = vld [vmem:[%s315_s30] sm:$0xf] }
 0x17f   : > { %2112 = vmatprep.subr.bf16.mxu0 %v3304_v27  ;;  %2284 = vmatprep.subr.bf16.mxu1 %v3307_v28  ;;  %v648_v27 = vrot.slane %v635_v22, %v647_v15  ;;  %v2359_v28 = vld [vmem:[%s324_s7] sm:$0xf] }
 0x182   : > { %2113 = vmatpush1.bf16.msra.mxu0 %v3302_v29  ;;  %2285 = vmatpush1.bf16.msra.mxu1 %v3305_v30  ;;  %v2334_v30 = vrot.slane %v2329_v26, %v639_v14 }
 0x183   : > { %2114 = vmatprep.subr.bf16.mxu0 %v3310_v31  ;;  %2286 = vmatprep.subr.bf16.mxu1 %v3313_v32  ;;  %v2342_v32 = vrot.slane %v2329_v26, %v647_v15 }
 0x186   : > { %2115 = vmatpush1.bf16.msra.mxu0 %v3308_v33  ;;  %2287 = vmatpush1.bf16.msra.mxu1 %v3311_v34  ;;  %v2338_v33 = vrot.slane %v2329_v26, %v643_v23  ;;  %v2346_v34 = vrot.slane %v2329_v26, %v651_v24 }
 0x187   : > { %2116 = vmatprep.subr.bf16.mxu0 %v3316_v35  ;;  %2288 = vmatprep.subr.bf16.mxu1 %v3319_v36  ;;  %v2364_v36 = vrot.slane %v2359_v28, %v639_v14 }
 0x18a   : > { %2117 = vmatpush1.bf16.msra.mxu0 %v3314_v37  ;;  %2289 = vmatpush1.bf16.msra.mxu1 %v3317_v38  ;;  %v2372_v38 = vrot.slane %v2359_v28, %v647_v15 }
 0x18b   : > { %2118 = vmatprep.subr.bf16.mxu0 %v3322_v39  ;;  %2290 = vmatprep.subr.bf16.mxu1 %v3325_v40 }
 0x18e   : > { %2119 = vmatpush1.bf16.msra.mxu0 %v3320_v41  ;;  %2291 = vmatpush1.bf16.msra.mxu1 %v3323_v42  ;;  %v2368_v42 = vrot.slane %v2359_v28, %v643_v23 }
 0x18f   : > { %2120 = vmatprep.subr.bf16.mxu0 %v3328_v43  ;;  %2292 = vmatprep.subr.bf16.mxu1 %v3331_v44  ;;  %v2376_v44 = vrot.slane %v2359_v28, %v651_v24 }
 0x192   : > { %2121 = vmatpush1.bf16.msra.mxu0 %v3326_v45  ;;  %2293 = vmatpush1.bf16.msra.mxu1 %v3329_v46 }
 0x193   : > { %2122 = vmatprep.subr.bf16.mxu0 %v3334_v47  ;;  %2294 = vmatprep.subr.bf16.mxu1 %v3337_v48 }
 0x196   : > { %2123 = vmatpush1.bf16.msra.mxu0 %v3332_v49  ;;  %2295 = vmatpush1.bf16.msra.mxu1 %v3335_v50 }
 0x197   : > { %2124 = vmatprep.subr.bf16.mxu0 %v3340_v51  ;;  %2296 = vmatprep.subr.bf16.mxu1 %v3343_v52 }
 0x19a   : > { %2125 = vmatpush1.bf16.msra.mxu0 %v3338_v53  ;;  %2297 = vmatpush1.bf16.msra.mxu1 %v3341_v54 }
 0x19b   : > { %2126 = vmatprep.subr.bf16.mxu0 %v3346_v55  ;;  %2298 = vmatprep.subr.bf16.mxu1 %v3349_v56 }
 0x19e   : > { %2127 = vmatpush1.bf16.msra.mxu0 %v3344_v57  ;;  %2299 = vmatpush1.bf16.msra.mxu1 %v3347_v58 }
 0x19f   : > { %2128 = vmatprep.subr.bf16.mxu0 %v3352_v59  ;;  %2300 = vmatprep.subr.bf16.mxu1 %v3355_v60 }
 0x1a2   : > { %2129 = vmatpush1.bf16.msra.mxu0 %v3350_v61  ;;  %2301 = vmatpush1.bf16.msra.mxu1 %v3353_v62 }
 0x1a3   : > { %2130 = vmatprep.subr.bf16.mxu0 %v3358_v63  ;;  %2302 = vmatprep.subr.bf16.mxu1 %v3361_v0 }
 0x1a6   : > { %2131 = vmatpush1.bf16.msra.mxu0 %v3356_v1  ;;  %2303 = vmatpush1.bf16.msra.mxu1 %v3359_v2 }
 0x1a7   : > { %2132 = vmatprep.subr.bf16.mxu0 %v3364_v3  ;;  %2304 = vmatprep.subr.bf16.mxu1 %v3367_v4 }
 0x1aa   : > { %2133 = vmatpush1.bf16.msra.mxu0 %v3362_v5  ;;  %2305 = vmatpush1.bf16.msra.mxu1 %v3365_v6 }
 0x1ab   : > { %2134 = vmatprep.subr.bf16.mxu0 %v3370_v7  ;;  %2306 = vmatprep.subr.bf16.mxu1 %v3373_v8 }
 0x1ae   : > { %2135 = vmatpush1.bf16.msra.mxu0 %v3368_v9  ;;  %2307 = vmatpush1.bf16.msra.mxu1 %v3371_v10 }
 0x1af   : > { %2136 = vmatprep.subr.bf16.mxu0 %v3376_v11  ;;  %2308 = vmatprep.subr.bf16.mxu1 %v3379_v12 }
 0x1b2   : > { %2137 = vmatpush1.bf16.msra.mxu0 %v3374_v13  ;;  %2309 = vmatpush1.bf16.msra.mxu1 %v3377_v18 }
 0x1b5   : > { %2139 = vmatmul.mubr.bf16.vlgmr.msra.gmra.mrb[0].mxu0 %v2608_v19  ;;  %2311 = vmatmul.mubr.bf16.vlgmr.msra.gmra.mrb[0].mxu1 %v2608_v19 }
 0x288   : > { %v2140_v29 = vpop.f32.mrb[0].mxu0  ;;  %v2312_v31 = vpop.f32.mrb[0].mxu1 }
 0x289   : > { %v2884_v35 = vadd.f32 %v2140_v29, %v640_v25  ;;  %v2888_v37 = vadd.f32 %v2312_v31, %v648_v27  ;;  %v2142_v39 = vpop.f32.mrb[1].mxu0  ;;  %v2314_v40 = vpop.f32.mrb[1].mxu1 }
 0x28a   : > { %v2885_v41 = vadd.f32 %v2142_v39, %v644_v16  ;;  %v2889_v43 = vadd.f32 %v2314_v40, %v652_v17  ;;  %v2144_v45 = vpop.f32.mrb[2].mxu0  ;;  %v2316_v46 = vpop.f32.mrb[2].mxu1 }
 0x28b   : > { %v2321_v47 = vmax.f32 %v2884_v35, 0.0  ;;  %v2323_v48 = vmax.f32 %v2888_v37, 0.0  ;;  %v2886_v49 = vadd.f32 %v2144_v45, %v640_v25  ;;  %v2890_v50 = vadd.f32 %v2316_v46, %v648_v27  ;;  %v2146_v51 = vpop.f32.mrb[3].mxu0  ;;  %v2318_v52 = vpop.f32.mrb[3].mxu1 }
 0x28c   : > { %v2322_v53 = vmax.f32 %v2885_v41, 0.0  ;;  %v2324_v54 = vmax.f32 %v2889_v43, 0.0  ;;  %v2887_v55 = vadd.f32 %v2146_v51, %v644_v16  ;;  %v2891_v56 = vadd.f32 %v2318_v52, %v652_v17 }
 0x28d   : > { %v2351_v57 = vmul.f32 %v2334_v30, %v2321_v47  ;;  %v2353_v58 = vmul.f32 %v2342_v32, %v2323_v48  ;;  %v2325_v59 = vmax.f32 %v2886_v49, 0.0  ;;  %v2327_v60 = vmax.f32 %v2890_v50, 0.0 }
 0x28e   : > { %v2352_v61 = vmul.f32 %v2338_v33, %v2322_v53  ;;  %v2354_v62 = vmul.f32 %v2346_v34, %v2324_v54  ;;  %v2326_v63 = vmax.f32 %v2887_v55, 0.0  ;;  %v2328_v0 = vmax.f32 %v2891_v56, 0.0 }
 0x28f   : > { %v2381_v1 = vadd.f32 %v2364_v36, %v2351_v57  ;;  %v2383_v2 = vadd.f32 %v2372_v38, %v2353_v58  ;;  %v2355_v3 = vmul.f32 %v2334_v30, %v2325_v59  ;;  %v2357_v4 = vmul.f32 %v2342_v32, %v2327_v60 }
 0x290   : > { %v2382_v5 = vadd.f32 %v2368_v42, %v2352_v61  ;;  %v2384_v6 = vadd.f32 %v2376_v44, %v2354_v62  ;;  %v2356_v7 = vmul.f32 %v2338_v33, %v2326_v63  ;;  %v2358_v8 = vmul.f32 %v2346_v34, %v2328_v0 }
 0x291   : > { %v2385_v9 = vadd.f32 %v2364_v36, %v2355_v3  ;;  %v2387_v10 = vadd.f32 %v2372_v38, %v2357_v4 }
 0x292   : > { %v2879_v11 = vpack.c.bf16 %v2382_v5, %v2381_v1  ;;  %v2880_v12 = vpack.c.bf16 %v2384_v6, %v2383_v2  ;;  %v2386_v13 = vadd.f32 %v2368_v42, %v2356_v7  ;;  %v2388_v18 = vadd.f32 %v2376_v44, %v2358_v8 }
 0x294   : > { %2413 = vst [vmem:[%s365_s20] sm:$0xff] %v2879_v11  ;;  %2414 = vst [vmem:[%s365_s20 + $0x8] sm:$0xff] %v2880_v12  ;;  %v2881_v19 = vpack.c.bf16 %v2386_v13, %v2385_v9  ;;  %v2882_v20 = vpack.c.bf16 %v2388_v18, %v2387_v10 }
 0x296   : > { %2415 = vst [vmem:[%s365_s20 + $0x10] sm:$0xff] %v2881_v19  ;;  %2416 = vst [vmem:[%s365_s20 + $0x18] sm:$0xff] %v2882_v20 }
 0x297   : > { %3541 = shalt.err (!%p3538_p12)
}
 0x298   : > { %s3542_s14 = scalar_lea.hbm %s4194_s13, 512  ;;  %s3546_s3 = scalar_lea.hbm %s4242_s5, 2048 }
 0x299   : > { %p3543_p4 = scmp.ne.s32.totalorder %s4194_s13, %s3542_s14  ;;  %p3547_p8 = scmp.lt.u32.totalorder %s4194_s13, %s4242_s5 }
 0x29a   : > { %p3548_p9 = scmp.lt.u32.totalorder %s3546_s3, %s3542_s14  ;;  %p3550_p5 = scmp.lt.u32.totalorder %s3542_s14, %s4194_s13 }
 0x29b   : > { %p3544_p11 = pnand %p3543_p4, %p4280_p6 }
 0x29c   : > { %p3549_p13 = por %p3548_p9, %p3547_p8 }
 0x29d   : > { %p3545_p10 = pneg %p3544_p11 }
 0x29e   : > { %p3551_p1 = por %p3550_p5, %p3549_p13 }
 0x2a0   : > { %p3552_p2 = pnand %p3551_p1, %p3545_p10 }
 0x2a2   : > { %3555 = shalt.err (!%p3552_p2)
}
 0x2a3   : > { %s3615_s25 = smov 256   ;;  %s3616_s30 = smov 1024  }
 0x2a4   : > { %s3617_s7 = smov 16  }
 0x2a5   : > { %2928 = dma.vmem_to_hbm [thread:$0]  (%p4280_p6), %s4189_s29, 512, %s4194_s13, %s2418_s24, %s3615_s25, %s3616_s30, %s3617_s7  }
 0x2a6 PF: > { %p2954_p3 = scmp.ge.s32.totalorder %s3602_s21, 2  ;;  %s2446_s26 = sand.u32 1, %s3590_s18  }
 0x2a7   : > { %p4281_p0 = scmp.ne.s32.totalorder %s4269_s27, 0  ;;  %s2447_s20 = scalar_lea.sflag [#allocation4], %s2446_s26 }
 0x2a9   : > { %p2948_p7 = pnand %p2954_p3, %p4281_p0 }
 0x2ab   : > { %3585 = dma.done.wait (!%p2948_p7), %s2447_s20, 512  }
 0x2ac   : > { %3587 = vsyncadd (!%p2948_p7), %s2447_s20, 4294966784  ;;  %s4282_s21 = sld [smem:[#allocation17_spill]]  ;;  %s4283_s22 = sld [smem:[#allocation16_spill]] }
 0x2ad   : > { %s4284_s20 = sld [smem:[#allocation18_spill]]  ;;  %s4285_s18 = smov %s3594_s19 }
 0x2b2   : > { %p22_p12 = scmp.ge.s32.totalorder %s4282_s21, 6   ;;  %s4286_s19 = smov %s4283_s22 }
 0x2b4   :  { %24 = sbr.rel (!%p22_p12) target bundleno = 11 (0xb), region = 125 }
 0x2bb   :  { %2452 = vsyncpa [#allocation3], 1 }
 0x2bc   :  { %2454 = vsyncpa [#allocation3 + $0x1], 1 }
 0x2bd   :  { %2455 = vsyncpa [#allocation6], 1 }
 0x2be   :  { %2457 = vsyncpa [#allocation6 + $0x1], 1 }
 0x2bf   :  { %2458 = vsyncpa [#allocation9], 1 }
 0x2c0   :  { %2460 = vsyncpa [#allocation9 + $0x1], 1 }
 0x2c1   :  { %2461 = vsyncpa [#allocation4], 1 }
 0x2c2   :  { %2463 = vsyncpa [#allocation4 + $0x1], 1 }

</bundles_post_ra>
